<compile_context>
chip_gen: v5e
topology: v5e:2x2
jax: 0.10.0
libtpu: 0.0.40
codegen_flags: <defaults>
</compile_context>

<pallas_src>
import functools
import math

import jax
import jax.numpy as jnp
from jax.experimental import pallas as pl
from jax.experimental.pallas import tpu as pltpu

_BN_EPS = 1e-5
_VMEM_LIMIT = 32 * 1024 * 1024   # safe on v5e/v6e/v7x


def _round_up(x, m):
    return (x + m - 1) // m * m


# ----------------------------------------------------------------------------
# Tiling policies
# ----------------------------------------------------------------------------

def _k_tile(K):
    """Full-K resident when it fits comfortably in VMEM, else 512-wide k steps."""
    return K if K <= 4608 else 512


def _n_tile(N):
    return N if N <= 256 else 256


def _pick_tm(M):
    """Row tile that divides M exactly (full-M for small M, multiple of 8 else)."""
    if M <= 512:
        return M
    for t in range(512, 7, -8):
        if M % t == 0:
            return t
    return None  # caller pads (never hit for ResNet-50 shapes)


def _pick_rows(M, C, budget_bytes=4 << 20):
    """Row tile for elementwise kernels (~4 MiB of f32-equivalent per block)."""
    cap = max(8, budget_bytes // (4 * C))
    if M <= cap:
        return M
    start = cap - (cap % 8)
    for t in range(start, 7, -8):
        if M % t == 0:
            return t
    return M


# ----------------------------------------------------------------------------
# GEMM kernels (bf16 operands, f32 scratch accumulation, bf16 output,
# per-channel sum / sum-of-squares fused into the epilogue)
# ----------------------------------------------------------------------------

def _mm_stats_kernel(a_ref, b_ref, o_ref, s_ref, q_ref, acc_ref):
    k = pl.program_id(2)

    @pl.when(k == 0)
    def _():
        acc_ref[...] = jnp.zeros_like(acc_ref)

    acc_ref[...] += jnp.dot(a_ref[...], b_ref[...],
                            preferred_element_type=jnp.float32)

    @pl.when(k == pl.num_programs(2) - 1)
    def _():
        acc = acc_ref[...]
        o_ref[...] = acc.astype(o_ref.dtype)
        s_ref[...] = jnp.sum(acc, axis=0, keepdims=True)[None]
        q_ref[...] = jnp.sum(acc * acc, axis=0, keepdims=True)[None]


def _mm_bias_kernel(a_ref, b_ref, bias_ref, o_ref):
    @pl.when(pl.program_id(2) == 0)
    def _():
        o_ref[...] = jnp.broadcast_to(bias_ref[...], o_ref.shape)

    o_ref[...] += jnp.dot(a_ref[...], b_ref[...],
                          preferred_element_type=jnp.float32)


def pallas_matmul_stats(a, b):
    """a:[M,K] bf16, b:[K,N] bf16 -> (out[M,N] bf16, sum[1,N] f32, sumsq[1,N] f32)."""
    M, K = a.shape
    Kb, N = b.shape
    assert K == Kb, (K, Kb)

    tm = _pick_tm(M)
    pad_m = 0
    if tm is None:                      # generic fallback; unused for ResNet shapes
        tm = 256
        pad_m = _round_up(M, tm) - M
        a = jnp.pad(a, ((0, pad_m), (0, 0)))
    Mp = M + pad_m

    tn = _n_tile(N)
    tk = _k_tile(K)
    assert N % tn == 0 and K % tk == 0, (N, tn, K, tk)
    gi, gj, gk = Mp // tm, N // tn, K // tk

    out, s, q = pl.pallas_call(
        _mm_stats_kernel,
        out_shape=(jax.ShapeDtypeStruct((Mp, N), jnp.bfloat16),
                   jax.ShapeDtypeStruct((gi, 1, N), jnp.float32),
                   jax.ShapeDtypeStruct((gi, 1, N), jnp.float32)),
        grid_spec=pltpu.PrefetchScalarGridSpec(
            num_scalar_prefetch=0, grid=(gi, gj, gk),
            in_specs=[pl.BlockSpec((tm, tk), lambda i, j, k: (i, k)),
                      pl.BlockSpec((tk, tn), lambda i, j, k: (k, j))],
            out_specs=[pl.BlockSpec((tm, tn), lambda i, j, k: (i, j)),
                       pl.BlockSpec((1, 1, tn), lambda i, j, k: (i, 0, j)),
                       pl.BlockSpec((1, 1, tn), lambda i, j, k: (i, 0, j))],
            scratch_shapes=[pltpu.VMEM((tm, tn), jnp.float32)]),
        compiler_params=pltpu.CompilerParams(
            dimension_semantics=("parallel", "parallel", "arbitrary"),
            vmem_limit_bytes=_VMEM_LIMIT),
    )(a, b)

    if pad_m:
        out = out[:M]
    s = jnp.sum(s, axis=(0, 1))[None]           # zero-padded rows contribute 0
    q = jnp.sum(q, axis=(0, 1))[None]
    return out, s, q


# ----------------------------------------------------------------------------
# Direct 3x3 convolution kernel (no im2col in HBM) with fused BN stats
# ----------------------------------------------------------------------------

def _conv3x3_kernel(x_ref, w_ref, o_ref, s_ref, q_ref, *, stride, Ho, Wo):
    Cin = x_ref.shape[3]
    x = x_ref[0]                                  # (Hp, Wp, Cin), bf16, VMEM-resident
    hs = stride * (Ho - 1) + 1
    ws = stride * (Wo - 1) + 1
    acc = None
    for dh in range(3):
        for dw in range(3):
            a = x[dh:dh + hs:stride, dw:dw + ws:stride, :]      # (Ho, Wo, Cin)
            a2 = a.reshape(Ho * Wo, Cin)
            d = jnp.dot(a2, w_ref[dh * 3 + dw],
                        preferred_element_type=jnp.float32)
            acc = d if acc is None else acc + d
    o_ref[...] = acc.reshape(o_ref.shape).astype(o_ref.dtype)
    s_ref[...] = jnp.sum(acc, axis=0, keepdims=True)[None]
    q_ref[...] = jnp.sum(acc * acc, axis=0, keepdims=True)[None]


@functools.partial(jax.jit, static_argnames=("stride",))
def conv3x3(x, w9, stride=1):
    """x: NHWC bf16, w9: [9, Cin, Cout] bf16 -> (y NHWC bf16, sum, sumsq)."""
    N, H, W, Cin = x.shape
    Cout = w9.shape[2]
    Ho = (H + 2 - 3) // stride + 1
    Wo = (W + 2 - 3) // stride + 1
    xp = jnp.pad(x, ((0, 0), (1, 1), (1, 1), (0, 0)))
    Hp, Wp = H + 2, W + 2
    tn = _n_tile(Cout)
    kern = functools.partial(_conv3x3_kernel, stride=stride, Ho=Ho, Wo=Wo)

    out, s, q = pl.pallas_call(
        kern,
        out_shape=(jax.ShapeDtypeStruct((N, Ho, Wo, Cout), jnp.bfloat16),
                   jax.ShapeDtypeStruct((N, 1, Cout), jnp.float32),
                   jax.ShapeDtypeStruct((N, 1, Cout), jnp.float32)),
        grid_spec=pltpu.PrefetchScalarGridSpec(
            num_scalar_prefetch=0, grid=(N, Cout // tn),
            in_specs=[pl.BlockSpec((1, Hp, Wp, Cin), lambda n, j: (n, 0, 0, 0)),
                      pl.BlockSpec((9, Cin, tn), lambda n, j: (0, 0, j))],
            out_specs=[pl.BlockSpec((1, Ho, Wo, tn), lambda n, j: (n, 0, 0, j)),
                       pl.BlockSpec((1, 1, tn), lambda n, j: (n, 0, j)),
                       pl.BlockSpec((1, 1, tn), lambda n, j: (n, 0, j))]),
        compiler_params=pltpu.CompilerParams(
            dimension_semantics=("parallel", "parallel"),
            vmem_limit_bytes=_VMEM_LIMIT),
    )(xp, w9)
    return out, jnp.sum(s, axis=(0, 1))[None], jnp.sum(q, axis=(0, 1))[None]


# ----------------------------------------------------------------------------
# 1x1 conv (pure GEMM) and 7x7 stem conv (im2col + GEMM)
# ----------------------------------------------------------------------------

@functools.partial(jax.jit, static_argnames=("stride",))
def conv1x1(x, w, stride=1):
    """x: NHWC bf16, w: [Cin, Cout] bf16 -> (y NHWC bf16, sum, sumsq)."""
    if stride > 1:
        x = x[:, ::stride, ::stride, :]
    N, H, W, Cin = x.shape
    Cout = w.shape[1]
    out, s, q = pallas_matmul_stats(x.reshape(N * H * W, Cin), w)
    return out.reshape(N, H, W, Cout), s, q


@functools.partial(jax.jit, static_argnames=("kh", "kw", "stride", "pad"))
def conv_im2col(x, w_gemm, kh, kw, stride, pad):
    """Stem conv only (7x7 s2, Cin=3): bf16 im2col + GEMM with fused BN stats."""
    N, H, W, Cin = x.shape
    Cout = w_gemm.shape[1]
    Ho = (H + 2 * pad - kh) // stride + 1
    Wo = (W + 2 * pad - kw) // stride + 1
    xp = jnp.pad(x, ((0, 0), (pad, pad), (pad, pad), (0, 0))) if pad else x
    cols = []
    for dh in range(kh):
        for dw in range(kw):
            cols.append(xp[:, dh:dh + stride * (Ho - 1) + 1:stride,
                           dw:dw + stride * (Wo - 1) + 1:stride, :])
    patches = jnp.concatenate(cols, axis=-1).reshape(N * Ho * Wo, kh * kw * Cin)
    out, s, q = pallas_matmul_stats(patches, w_gemm)
    return out.reshape(N, Ho, Wo, Cout), s, q


# ----------------------------------------------------------------------------
# BatchNorm apply (batch stats come fused from the conv kernels)
# ----------------------------------------------------------------------------

def _bn_apply_kernel(x_ref, sc_ref, sh_ref, o_ref, *, relu):
    y = x_ref[...].astype(jnp.float32) * sc_ref[...] + sh_ref[...]
    if relu:
        y = jnp.maximum(y, 0.0)
    o_ref[...] = y.astype(o_ref.dtype)


def _bn_apply_res_kernel(x_ref, r_ref, sc_ref, sh_ref, o_ref):
    y = (x_ref[...].astype(jnp.float32) * sc_ref[...] + sh_ref[...]
         + r_ref[...].astype(jnp.float32))
    o_ref[...] = jnp.maximum(y, 0.0).astype(o_ref.dtype)


@functools.partial(jax.jit, static_argnames=("relu", "out_dtype"))
def batchnorm_from_stats(x4d, s, q, gamma, beta, residual=None, relu=True,
                         out_dtype=jnp.bfloat16):
    """Training-mode BN using per-channel sum / sumsq (+residual, +ReLU)."""
    N, H, W, C = x4d.shape
    M = N * H * W
    inv = 1.0 / M
    mean = s * inv
    var = jnp.maximum(q * inv - mean * mean, 0.0)     # biased var (PyTorch fwd)
    scale = gamma * jax.lax.rsqrt(var + _BN_EPS)
    shift = beta - mean * scale

    x2 = x4d.reshape(M, C)
    r2 = None if residual is None else residual.reshape(M, C)

    # Lane-densify narrow-channel (C=64) tensors: (M, 64) -> (M/2, 128).
    Cd, Md = C, M
    if r2 is None and C < 128 and 128 % C == 0 and M % (128 // C) == 0:
        f = 128 // C
        x2 = x2.reshape(M // f, 128)
        scale = jnp.tile(scale, (1, f))
        shift = jnp.tile(shift, (1, f))
        Cd, Md = 128, M // f

    tr = _pick_rows(Md, Cd)
    grid = (Md // tr,)
    row_spec = pl.BlockSpec((tr, Cd), lambda r: (r, 0))
    vec_spec = pl.BlockSpec((1, Cd), lambda r: (0, 0))
    cparams = pltpu.CompilerParams(dimension_semantics=("parallel",),
                                   vmem_limit_bytes=_VMEM_LIMIT)

    if r2 is None:
        y2 = pl.pallas_call(
            functools.partial(_bn_apply_kernel, relu=relu),
            out_shape=jax.ShapeDtypeStruct((Md, Cd), out_dtype),
            grid_spec=pltpu.PrefetchScalarGridSpec(
                num_scalar_prefetch=0, grid=grid,
                in_specs=[row_spec, vec_spec, vec_spec],
                out_specs=row_spec),
            compiler_params=cparams,
        )(x2, scale, shift)
    else:
        y2 = pl.pallas_call(
            _bn_apply_res_kernel,
            out_shape=jax.ShapeDtypeStruct((Md, Cd), out_dtype),
            grid_spec=pltpu.PrefetchScalarGridSpec(
                num_scalar_prefetch=0, grid=grid,
                in_specs=[row_spec, row_spec, vec_spec, vec_spec],
                out_specs=row_spec),
            compiler_params=cparams,
        )(x2, r2, scale, shift)
    return y2.reshape(N, H, W, C)


# ----------------------------------------------------------------------------
# Max pool 3x3 / stride 2 (whole padded image per grid step, bf16 end-to-end)
# ----------------------------------------------------------------------------

def _maxpool_kernel(x_ref, o_ref, *, Ho, Wo):
    x = x_ref[0]                                  # (Hp, Wp, C)
    hs = 2 * (Ho - 1) + 1
    ws = 2 * (Wo - 1) + 1
    m = None
    for dh in range(3):
        for dw in range(3):
            v = x[dh:dh + hs:2, dw:dw + ws:2, :]
            m = v if m is None else jnp.maximum(m, v)
    o_ref[...] = m[None].astype(o_ref.dtype)


@jax.jit
def maxpool_3x3_s2(x):
    """x: NHWC bf16 -> NHWC bf16 (kernel 3, stride 2, pad 1)."""
    N, H, W, C = x.shape
    Ho = (H - 1) // 2 + 1
    Wo = (W - 1) // 2 + 1
    neg = float(jnp.finfo(jnp.bfloat16).min)
    xp = jnp.pad(x.astype(jnp.bfloat16), ((0, 0), (1, 1), (1, 1), (0, 0)),
                 constant_values=neg)
    Hp, Wp = H + 2, W + 2
    kern = functools.partial(_maxpool_kernel, Ho=Ho, Wo=Wo)
    return pl.pallas_call(
        kern,
        out_shape=jax.ShapeDtypeStruct((N, Ho, Wo, C), jnp.bfloat16),
        grid_spec=pltpu.PrefetchScalarGridSpec(
            num_scalar_prefetch=0, grid=(N,),
            in_specs=[pl.BlockSpec((1, Hp, Wp, C), lambda n: (n, 0, 0, 0))],
            out_specs=pl.BlockSpec((1, Ho, Wo, C), lambda n: (n, 0, 0, 0))),
        compiler_params=pltpu.CompilerParams(
            dimension_semantics=("parallel",),
            vmem_limit_bytes=_VMEM_LIMIT),
    )(xp)


# ----------------------------------------------------------------------------
# Global average pool (adaptive avgpool to 1x1), tiled per image
# ----------------------------------------------------------------------------

def _meanpool_kernel(x_ref, o_ref):
    o_ref[...] = jnp.mean(x_ref[...].astype(jnp.float32), axis=1, keepdims=True)


@jax.jit
def global_avgpool(x):
    """x: NHWC bf16 -> [N, C] f32."""
    N, H, W, C = x.shape
    x3 = x.reshape(N, H * W, C)
    out = pl.pallas_call(
        _meanpool_kernel,
        out_shape=jax.ShapeDtypeStruct((N, 1, C), jnp.float32),
        grid_spec=pltpu.PrefetchScalarGridSpec(
            num_scalar_prefetch=0, grid=(N,),
            in_specs=[pl.BlockSpec((1, H * W, C), lambda n: (n, 0, 0))],
            out_specs=pl.BlockSpec((1, 1, C), lambda n: (n, 0, 0))),
        compiler_params=pltpu.CompilerParams(
            dimension_semantics=("parallel",),
            vmem_limit_bytes=_VMEM_LIMIT),
    )(x3)
    return out.reshape(N, C)


# ----------------------------------------------------------------------------
# Final fully-connected layer (bias fused in the matmul epilogue)
# ----------------------------------------------------------------------------

@functools.partial(jax.jit, static_argnames=("n_out",))
def linear(x, w, bias, n_out):
    M, K = x.shape
    _, N = w.shape
    tm = _pick_tm(M)
    tn = _n_tile(N)
    tk = _k_tile(K)
    out = pl.pallas_call(
        _mm_bias_kernel,
        out_shape=jax.ShapeDtypeStruct((M, N), jnp.float32),
        grid_spec=pltpu.PrefetchScalarGridSpec(
            num_scalar_prefetch=0, grid=(M // tm, N // tn, K // tk),
            in_specs=[pl.BlockSpec((tm, tk), lambda i, j, k: (i, k)),
                      pl.BlockSpec((tk, tn), lambda i, j, k: (k, j)),
                      pl.BlockSpec((1, tn), lambda i, j, k: (0, j))],
            out_specs=pl.BlockSpec((tm, tn), lambda i, j, k: (i, j))),
        compiler_params=pltpu.CompilerParams(
            dimension_semantics=("parallel", "parallel", "arbitrary"),
            vmem_limit_bytes=_VMEM_LIMIT),
    )(x, w, bias)
    return out[:, :n_out]


# ----------------------------------------------------------------------------
# ResNet-50 built from the kernels above
# ----------------------------------------------------------------------------

def bottleneck(x, blk, stride):
    identity = x
    y, s, q = conv1x1(x, blk["conv1_w"])
    y = batchnorm_from_stats(y, s, q, *blk["bn1"], relu=True)
    y, s, q = conv3x3(y, blk["conv2_w"], stride=stride)
    y = batchnorm_from_stats(y, s, q, *blk["bn2"], relu=True)
    y, s, q = conv1x1(y, blk["conv3_w"])
    if "down_w" in blk:
        idn, ds, dq = conv1x1(x, blk["down_w"], stride=stride)
        identity = batchnorm_from_stats(idn, ds, dq, *blk["down_bn"], relu=False)
    return batchnorm_from_stats(y, s, q, *blk["bn3"], residual=identity, relu=True)


def resnet50_forward(params, x_nchw):
    # NCHW (PyTorch) -> NHWC (TPU lane-friendly); bf16 activations between layers.
    x = jnp.transpose(x_nchw.astype(jnp.float32), (0, 2, 3, 1)).astype(jnp.bfloat16)
    y, s, q = conv_im2col(x, params["conv1_w"], 7, 7, 2, 3)
    x = batchnorm_from_stats(y, s, q, *params["bn1"], relu=True)    # bf16
    x = maxpool_3x3_s2(x)                                           # bf16
    layer_strides = (1, 2, 2, 2)
    for li in range(4):
        for bi, blk in enumerate(params[f"layer{li + 1}"]):
            stride = layer_strides[li] if bi == 0 else 1
            x = bottleneck(x, blk, stride)
    pooled = global_avgpool(x)                                      # [N, 2048] f32
    return linear(pooled.astype(jnp.bfloat16),
                  params["fc_w"], params["fc_b"], params["fc_out"])


# ----------------------------------------------------------------------------
# Deterministic parameter init (synthetic; ResNet-50 shapes)
# ----------------------------------------------------------------------------

class _KeyGen:
    def __init__(self, seed):
        self._key = jax.random.PRNGKey(seed)

    def __call__(self):
        self._key, sub = jax.random.split(self._key)
        return sub


def _init_conv_gemm(kg, kh, kw, cin, cout):
    fan_in = kh * kw * cin
    w = (jax.random.normal(kg(), (kh * kw * cin, cout), jnp.float32)
         * (1.0 / math.sqrt(fan_in)))
    return w.astype(jnp.bfloat16)


def _init_conv3(kg, cin, cout):
    fan_in = 9 * cin
    w = (jax.random.normal(kg(), (9, cin, cout), jnp.float32)
         * (1.0 / math.sqrt(fan_in)))
    return w.astype(jnp.bfloat16)


def _init_bn(kg, c):
    gamma = 1.0 + 0.1 * jax.random.normal(kg(), (1, c), jnp.float32)
    beta = 0.1 * jax.random.normal(kg(), (1, c), jnp.float32)
    return (gamma, beta)


def make_resnet50_params(seed=0):
    kg = _KeyGen(seed)
    p = {}
    p["conv1_w"] = _init_conv_gemm(kg, 7, 7, 3, 64)
    p["bn1"] = _init_bn(kg, 64)
    cfg = [(64, 3), (128, 4), (256, 6), (512, 3)]    # (planes, num_blocks)
    in_c = 64
    for li, (planes, nblocks) in enumerate(cfg):
        stride = 1 if li == 0 else 2
        layer = []
        for bi in range(nblocks):
            s = stride if bi == 0 else 1
            blk = {
                "conv1_w": _init_conv_gemm(kg, 1, 1, in_c, planes),
                "bn1": _init_bn(kg, planes),
                "conv2_w": _init_conv3(kg, planes, planes),
                "bn2": _init_bn(kg, planes),
                "conv3_w": _init_conv_gemm(kg, 1, 1, planes, planes * 4),
                "bn3": _init_bn(kg, planes * 4),
            }
            if s != 1 or in_c != planes * 4:
                blk["down_w"] = _init_conv_gemm(kg, 1, 1, in_c, planes * 4)
                blk["down_bn"] = _init_bn(kg, planes * 4)
            layer.append(blk)
            in_c = planes * 4
        p[f"layer{li + 1}"] = layer

    n_classes = 1000
    n_pad = _round_up(n_classes, 256) - n_classes               # 1000 -> 1024
    fc_w = (jax.random.normal(kg(), (2048, n_classes), jnp.float32)
            * (1.0 / math.sqrt(2048.0)))
    fc_b = 0.01 * jax.random.normal(kg(), (1, n_classes), jnp.float32)
    p["fc_w"] = jnp.pad(fc_w, ((0, 0), (0, n_pad))).astype(jnp.bfloat16)
    p["fc_b"] = jnp.pad(fc_b, ((0, 0), (0, n_pad)))
    p["fc_out"] = n_classes
    return p


# TODO(synk): BN uses training-mode batch statistics (torchvision default .train());
# an .eval()-mode reference with running stats would need those buffers plumbed in.

if __name__ == "__main__":
    params = make_resnet50_params(seed=0)

    # Small, module-consistent input: batch=2, 3 channels, 32x32 spatial (NCHW).
    x = jax.random.normal(jax.random.PRNGKey(0), (2, 3, 32, 32), jnp.float32)

    logits = resnet50_forward(params, x)
    logits = jax.block_until_ready(logits)

    assert logits.shape == (2, 1000), logits.shape
    assert bool(jnp.isfinite(logits).all())
    print("KERNEL_OK")
</pallas_src>

<mosaic_0001>
module attributes {stable_mosaic.version = 11 : i64} {
  func.func @_mm_stats_kernel(%arg0: i32, %arg1: i32, %arg2: i32, %arg3: memref<512x147xbf16, #tpu.memory_space<vmem>>, %arg4: memref<147x64xbf16, #tpu.memory_space<vmem>>, %arg5: memref<512x64xbf16, #tpu.memory_space<vmem>>, %arg6: memref<1x1x64xf32, #tpu.memory_space<vmem>>, %arg7: memref<1x1x64xf32, #tpu.memory_space<vmem>>, %arg8: memref<512x64xf32, #tpu.memory_space<vmem>>) attributes {dimension_semantics = [#tpu.dimension_semantics<parallel>, #tpu.dimension_semantics<parallel>, #tpu.dimension_semantics<arbitrary>], iteration_bounds = array<i64: 1, 1, 1>, scalar_prefetch = 0 : i64, scratch_operands = 1 : i64, tpu.core_type = #tpu.core_type<tc>, window_params = [{transform_indices = @transform_0, window_bounds = array<i64: 512, 147>}, {transform_indices = @transform_1, window_bounds = array<i64: 147, 64>}, {transform_indices = @transform_2, window_bounds = array<i64: 512, 64>}, {transform_indices = @transform_3, window_bounds = array<i64: 1, 1, 64>}, {transform_indices = @transform_4, window_bounds = array<i64: 1, 1, 64>}]} {
    %c0_i32 = arith.constant 0 : i32
    %0 = arith.cmpi eq, %arg2, %c0_i32 : i32
    %1 = arith.extui %0 : i1 to i32
    %c0_i32_0 = arith.constant 0 : i32
    %2 = arith.cmpi ne, %1, %c0_i32_0 : i32
    scf.if %2 {
      %cst_10 = arith.constant 0.000000e+00 : f32
      %12 = vector.broadcast %cst_10 : f32 to vector<512x64xf32>
      %c0_11 = arith.constant 0 : index
      %c0_12 = arith.constant 0 : index
      %13 = vector.load %arg8[%c0_11, %c0_12] : memref<512x64xf32, #tpu.memory_space<vmem>>, vector<512x64xf32>
      tpu.vector_store %arg8[%c0_11, %c0_12], %12 {strides = array<i32>} : memref<512x64xf32, #tpu.memory_space<vmem>>, vector<512x64xf32>,
    } else {
    }
    %c0 = arith.constant 0 : index
    %c0_1 = arith.constant 0 : index
    %3 = vector.load %arg8[%c0, %c0_1] : memref<512x64xf32, #tpu.memory_space<vmem>>, vector<512x64xf32>
    %c0_2 = arith.constant 0 : index
    %c0_3 = arith.constant 0 : index
    %4 = vector.load %arg3[%c0_2, %c0_3] : memref<512x147xbf16, #tpu.memory_space<vmem>>, vector<512x147xbf16>
    %c0_4 = arith.constant 0 : index
    %c0_5 = arith.constant 0 : index
    %5 = vector.load %arg4[%c0_4, %c0_5] : memref<147x64xbf16, #tpu.memory_space<vmem>>, vector<147x64xbf16>
    %cst = arith.constant dense<0.000000e+00> : vector<512x64xf32>
    %6 = tpu.matmul %4, %5, %cst {dimension_numbers = #tpu.dot_dimension_numbers<[1], [0], [0], [1], [0, 0, 1, 1], [], []>} : vector<512x147xbf16>, vector<147x64xbf16>, vector<512x64xf32> -> vector<512x64xf32>
    %7 = arith.addf %3, %6 : vector<512x64xf32>
    %c0_6 = arith.constant 0 : index
    %c0_7 = arith.constant 0 : index
    %8 = vector.load %arg8[%c0_6, %c0_7] : memref<512x64xf32, #tpu.memory_space<vmem>>, vector<512x64xf32>
    tpu.vector_store %arg8[%c0_6, %c0_7], %7 {strides = array<i32>} : memref<512x64xf32, #tpu.memory_space<vmem>>, vector<512x64xf32>,
    %c0_i32_8 = arith.constant 0 : i32
    %9 = arith.cmpi eq, %arg2, %c0_i32_8 : i32
    %10 = arith.extui %9 : i1 to i32
    %c0_i32_9 = arith.constant 0 : i32
    %11 = arith.cmpi ne, %10, %c0_i32_9 : i32
    scf.if %11 {
      %c0_10 = arith.constant 0 : index
      %c0_11 = arith.constant 0 : index
      %12 = vector.load %arg8[%c0_10, %c0_11] : memref<512x64xf32, #tpu.memory_space<vmem>>, vector<512x64xf32>
      %13 = arith.truncf %12 : vector<512x64xf32> to vector<512x64xbf16>
      %c0_12 = arith.constant 0 : index
      %c0_13 = arith.constant 0 : index
      %14 = vector.load %arg5[%c0_12, %c0_13] : memref<512x64xbf16, #tpu.memory_space<vmem>>, vector<512x64xbf16>
      tpu.vector_store %arg5[%c0_12, %c0_13], %13 {strides = array<i32>} : memref<512x64xbf16, #tpu.memory_space<vmem>>, vector<512x64xbf16>,
      %cst_14 = arith.constant dense<0.000000e+00> : vector<64xf32>
      %15 = vector.multi_reduction <add>, %12, %cst_14 [0] : vector<512x64xf32> to vector<64xf32>
      %16 = vector.shape_cast %15 : vector<64xf32> to vector<1x64xf32>
      %17 = vector.shape_cast %16 : vector<1x64xf32> to vector<1x1x64xf32>
      %c0_15 = arith.constant 0 : index
      %c0_16 = arith.constant 0 : index
      %c0_17 = arith.constant 0 : index
      %18 = vector.load %arg6[%c0_15, %c0_16, %c0_17] : memref<1x1x64xf32, #tpu.memory_space<vmem>>, vector<1x1x64xf32>
      tpu.vector_store %arg6[%c0_15, %c0_16, %c0_17], %17 {strides = array<i32>} : memref<1x1x64xf32, #tpu.memory_space<vmem>>, vector<1x1x64xf32>,
      %19 = arith.mulf %12, %12 : vector<512x64xf32>
      %cst_18 = arith.constant dense<0.000000e+00> : vector<64xf32>
      %20 = vector.multi_reduction <add>, %19, %cst_18 [0] : vector<512x64xf32> to vector<64xf32>
      %21 = vector.shape_cast %20 : vector<64xf32> to vector<1x64xf32>
      %22 = vector.shape_cast %21 : vector<1x64xf32> to vector<1x1x64xf32>
      %c0_19 = arith.constant 0 : index
      %c0_20 = arith.constant 0 : index
      %c0_21 = arith.constant 0 : index
      %23 = vector.load %arg7[%c0_19, %c0_20, %c0_21] : memref<1x1x64xf32, #tpu.memory_space<vmem>>, vector<1x1x64xf32>
      tpu.vector_store %arg7[%c0_19, %c0_20, %c0_21], %22 {strides = array<i32>} : memref<1x1x64xf32, #tpu.memory_space<vmem>>, vector<1x1x64xf32>,
    } else {
    }
    return
  }
  func.func @transform_0(%arg0: i32, %arg1: i32, %arg2: i32) -> (i32, i32) {
    %c0_i32 = arith.constant 0 : i32
    return %arg0, %arg2 : i32, i32
  }
  func.func @transform_1(%arg0: i32, %arg1: i32, %arg2: i32) -> (i32, i32) {
    %c0_i32 = arith.constant 0 : i32
    return %arg2, %arg1 : i32, i32
  }
  func.func @transform_2(%arg0: i32, %arg1: i32, %arg2: i32) -> (i32, i32) {
    %c0_i32 = arith.constant 0 : i32
    return %arg0, %arg1 : i32, i32
  }
  func.func @transform_3(%arg0: i32, %arg1: i32, %arg2: i32) -> (i32, i32, i32) {
    %c0_i32 = arith.constant 0 : i32
    %c0_i32_0 = arith.constant 0 : i32
    return %arg0, %c0_i32, %arg1 : i32, i32, i32
  }
  func.func @transform_4(%arg0: i32, %arg1: i32, %arg2: i32) -> (i32, i32, i32) {
    %c0_i32 = arith.constant 0 : i32
    %c0_i32_0 = arith.constant 0 : i32
    return %arg0, %c0_i32, %arg1 : i32, i32, i32
  }
}

</mosaic_0001>

<bundles_post_ra>
// kernel: conv_im2col.1
= control target key start
LH: loop header
LB: loop body
LE: loop exit
PB: predicated region body
PF: predicated region fallthrough
CT: control target
= control target key end

     0   :  { %10 = vsyncpa [#allocation4], 0  ;;  %vm675_vm0 = vcmask 1040384   ;;  %vm676_vm1 = vcmask 1041408   ;;  %v2223_v4 = vmov 65535   ;;  %s3394_s0 = inlined_call_operand.vmem [shape: bf16[512,147], index: 0, kind: input, shape index: {}]   ;;  %s3395_s1 = inlined_call_operand.vmem [shape: bf16[147,64], index: 1, kind: input, shape index: {}]   ;;  %s3396_s2 = inlined_call_operand.hbm [shape: bf16[512,64], index: 2, kind: output, shape index: {0}]   ;;  %s3397_s3 = inlined_call_operand.hbm [shape: f32[1,1,64], index: 3, kind: output, shape index: {1}]   ;;  %s3398_s4 = inlined_call_operand.hbm [shape: f32[1,1,64], index: 4, kind: output, shape index: {2}]  }
   0x1   :  { %v2122_v0 = vld [vmem:[%s3395_s1 + $0x38] sm:$0xff]  ;;  %v232_v1 = vld [vmem:[%s3395_s1 + $0x48] sm:$0x3]  ;;  %v2121_v3 = vld [vmem:[%s3395_s1 + $0x30] sm:$0xff]  ;;  %v677_v5 = vsel %vm675_vm0, 4294967295, %v2223_v4 }
   0x2   :  { %v558_v2 = vunpack.c.l.b16 %v232_v1  ;;  %682 = vmatpush.bf16.msra.mxu0 %v2122_v0  ;;  %2124 = vmatpush.bf16.msra.mxu2 %v2122_v0  ;;  %v678_v7 = vsel %vm676_vm1, %v677_v5, 0  ;;  %v2120_v9 = vld [vmem:[%s3395_s1 + $0x28] sm:$0xff] }
   0x4   :  { %v568_v6 = vpack.c.b16 %v558_v2, %v558_v2 }
   0x6   :  { %v680_v8 = vand.u32 %v678_v7, %v568_v6  ;;  %683 = vmatpush.bf16.msra.mxu0 %v2121_v3  ;;  %2125 = vmatpush.bf16.msra.mxu2 %v2121_v3 }
   0x7   :  { %11 = vsyncpa [#allocation6], 0  ;;  %v2123_v10 = vld [vmem:[%s3395_s1 + $0x40] sm:$0xff]  ;;  %v1731_v12 = vld [vmem:[%s3394_s0 + $0x8] sm:$0xf0]  ;;  %vm578_vm2 = vcmask 154624  }
   0x8   :  { %857 = vmatpush.bf16.msra.mxu1 %v680_v8  ;;  %v2051_v11 = vld [vmem:[%s3394_s0 + $0x4] sm:$0xf]  ;;  %2132 = vmatpush.bf16.msra.mxu3 %v680_v8  ;;  %v2118_v15 = vld [vmem:[%s3395_s1 + $0x18] sm:$0xff]  ;;  %v2117_v16 = vld [vmem:[%s3395_s1 + $0x10] sm:$0xff]  ;;  %vm21_vm3 = vcmask 523264   ;;  %vm1280_vm4 = vcmask 519168  }
   0x9   :  { %v1734_v13 = vor.u32 %v2051_v11, %v1731_v12  ;;  %v2119_v14 = vld [vmem:[%s3395_s1 + $0x20] sm:$0xff]  ;;  %v2116_v17 = vld [vmem:[%s3395_s1 + $0x8] sm:$0xff]  ;;  %v2053_v18 = vld [vmem:[%s3394_s0 + $0x14] sm:$0xf]  ;;  %s1684_s24 = sshll.u32 %s3396_s2, 4  ;;  %s2226_s2 = smov 64   ;;  %s1685_s24 = int_to_ptr.hbm [resolvable:$true] %s1684_s24 }
   0xa   :  { %684 = vmatpush.bf16.msra.mxu0 %v2120_v9  ;;  %2126 = vmatpush.bf16.msra.mxu2 %v2120_v9  ;;  %v1739_v19 = vld [vmem:[%s3394_s0 + $0x18] sm:$0xf0]  ;;  %v2115_v21 = vld [vmem:[%s3395_s1] sm:$0xff]  ;;  %v2052_v23 = vld [vmem:[%s3394_s0 + $0x4] sm:$0xf0]  ;;  %s2227_s25 = smov 4  }
   0xb   :  { %v1742_v20 = vor.u32 %v2053_v18, %v1739_v19  ;;  %v1729_v22 = vld [vmem:[%s3394_s0] sm:$0xf]  ;;  %v2055_v25 = vld [vmem:[%s3394_s0 + $0x24] sm:$0xf]  ;;  %v1747_v26 = vld [vmem:[%s3394_s0 + $0x28] sm:$0xf0] }
   0xc   :  { %858 = vmatpush.bf16.msra.mxu1 %v2123_v10  ;;  %2133 = vmatpush.bf16.msra.mxu3 %v2123_v10  ;;  %v1730_v24 = vor.u32 %v2052_v23, %v1729_v22  ;;  %v1750_v27 = vor.u32 %v2055_v25, %v1747_v26  ;;  %v1737_v28 = vld [vmem:[%s3394_s0 + $0x10] sm:$0xf]  ;;  %v2054_v29 = vld [vmem:[%s3394_s0 + $0x14] sm:$0xf0]  ;;  %v1857_v31 = vld [vmem:[%s3394_s0 + $0x100] sm:$0xf] }
   0xd   :  { %v1738_v30 = vor.u32 %v2054_v29, %v1737_v28  ;;  %v2084_v32 = vld [vmem:[%s3394_s0 + $0x104] sm:$0xf0]  ;;  %v2057_v34 = vld [vmem:[%s3394_s0 + $0x34] sm:$0xf]  ;;  %v1755_v35 = vld [vmem:[%s3394_s0 + $0x38] sm:$0xf0] }
   0xe   :  { %685 = vmatpush.bf16.msra.mxu0 %v2119_v14  ;;  %2127 = vmatpush.bf16.msra.mxu2 %v2119_v14  ;;  %v1858_v33 = vor.u32 %v2084_v32, %v1857_v31  ;;  %v1758_v36 = vor.u32 %v2057_v34, %v1755_v35  ;;  %v1745_v37 = vld [vmem:[%s3394_s0 + $0x20] sm:$0xf]  ;;  %v2056_v38 = vld [vmem:[%s3394_s0 + $0x24] sm:$0xf0]  ;;  %v1865_v40 = vld [vmem:[%s3394_s0 + $0x110] sm:$0xf] }
   0xf   :  { %2019 = vmatmul.msk.bf16.vlgmr.msra.gmra.mxu1 %vm578_vm2, %v1734_v13  ;;  %v1746_v39 = vor.u32 %v2056_v38, %v1745_v37  ;;  %v2086_v41 = vld [vmem:[%s3394_s0 + $0x114] sm:$0xf0]  ;;  %v2085_v42 = vld [vmem:[%s3394_s0 + $0x114] sm:$0xf]  ;;  %v1867_v44 = vld [vmem:[%s3394_s0 + $0x118] sm:$0xf0] }
  0x10   :  { %v1866_v43 = vor.u32 %v2086_v41, %v1865_v40  ;;  %v1870_v45 = vor.u32 %v2085_v42, %v1867_v44  ;;  %v2059_v46 = vld [vmem:[%s3394_s0 + $0x44] sm:$0xf]  ;;  %v1763_v47 = vld [vmem:[%s3394_s0 + $0x48] sm:$0xf0]  ;;  %v1753_v49 = vld [vmem:[%s3394_s0 + $0x30] sm:$0xf] }
  0x11   :  { %v1766_v48 = vor.u32 %v2059_v46, %v1763_v47  ;;  %v2058_v50 = vld [vmem:[%s3394_s0 + $0x34] sm:$0xf0]  ;;  %v1873_v52 = vld [vmem:[%s3394_s0 + $0x120] sm:$0xf]  ;;  %v2088_v53 = vld [vmem:[%s3394_s0 + $0x124] sm:$0xf0] }
  0x12   :  { %686 = vmatpush.bf16.msra.mxu0 %v2118_v15  ;;  %2128 = vmatpush.bf16.msra.mxu2 %v2118_v15  ;;  %v1754_v51 = vor.u32 %v2058_v50, %v1753_v49  ;;  %v2087_v54 = vld [vmem:[%s3394_s0 + $0x124] sm:$0xf]  ;;  %v1874_v55 = vor.u32 %v2088_v53, %v1873_v52  ;;  %v1875_v56 = vld [vmem:[%s3394_s0 + $0x128] sm:$0xf0]  ;;  %v2061_v58 = vld [vmem:[%s3394_s0 + $0x54] sm:$0xf] }
  0x13   :  { %2036 = vmatmul.msk.bf16.vlgmr.msra.gmra.mxu3 %vm578_vm2, %v1870_v45  ;;  %v1878_v57 = vor.u32 %v2087_v54, %v1875_v56  ;;  %v1771_v59 = vld [vmem:[%s3394_s0 + $0x58] sm:$0xf0]  ;;  %v1761_v61 = vld [vmem:[%s3394_s0 + $0x40] sm:$0xf]  ;;  %v2060_v62 = vld [vmem:[%s3394_s0 + $0x44] sm:$0xf0] }
  0x14   :  { %v1774_v60 = vor.u32 %v2061_v58, %v1771_v59  ;;  %v1762_v63 = vor.u32 %v2060_v62, %v1761_v61  ;;  %v1881_v0 = vld [vmem:[%s3394_s0 + $0x130] sm:$0xf]  ;;  %v2090_v1 = vld [vmem:[%s3394_s0 + $0x134] sm:$0xf0]  ;;  %v2089_v2 = vld [vmem:[%s3394_s0 + $0x134] sm:$0xf] }
  0x15   :  { %v1882_v3 = vor.u32 %v2090_v1, %v1881_v0  ;;  %v1883_v4 = vld [vmem:[%s3394_s0 + $0x138] sm:$0xf0]  ;;  %v2063_v6 = vld [vmem:[%s3394_s0 + $0x64] sm:$0xf]  ;;  %v1779_v7 = vld [vmem:[%s3394_s0 + $0x68] sm:$0xf0] }
  0x16   :  { %687 = vmatpush.bf16.msra.mxu0 %v2117_v16  ;;  %2129 = vmatpush.bf16.msra.mxu2 %v2117_v16  ;;  %v1886_v5 = vor.u32 %v2089_v2, %v1883_v4  ;;  %v1782_v8 = vor.u32 %v2063_v6, %v1779_v7  ;;  %v1769_v9 = vld [vmem:[%s3394_s0 + $0x50] sm:$0xf]  ;;  %v2062_v10 = vld [vmem:[%s3394_s0 + $0x54] sm:$0xf0]  ;;  %v1889_v12 = vld [vmem:[%s3394_s0 + $0x140] sm:$0xf] }
  0x17   :  { %v1770_v11 = vor.u32 %v2062_v10, %v1769_v9  ;;  %v2092_v13 = vld [vmem:[%s3394_s0 + $0x144] sm:$0xf0]  ;;  %v2091_v14 = vld [vmem:[%s3394_s0 + $0x144] sm:$0xf]  ;;  %v1891_v16 = vld [vmem:[%s3394_s0 + $0x148] sm:$0xf0] }
  0x18   :  { %v1890_v15 = vor.u32 %v2092_v13, %v1889_v12  ;;  %v2065_v18 = vld [vmem:[%s3394_s0 + $0x74] sm:$0xf]  ;;  %v1787_v19 = vld [vmem:[%s3394_s0 + $0x78] sm:$0xf0]  ;;  %v1777_v22 = vld [vmem:[%s3394_s0 + $0x60] sm:$0xf] }
  0x19   :  { %v2064_v23 = vld [vmem:[%s3394_s0 + $0x64] sm:$0xf0]  ;;  %v1897_v25 = vld [vmem:[%s3394_s0 + $0x150] sm:$0xf]  ;;  %v2094_v26 = vld [vmem:[%s3394_s0 + $0x154] sm:$0xf0] }
  0x1a   :  { %688 = vmatpush.bf16.msra.mxu0 %v2116_v17  ;;  %2130 = vmatpush.bf16.msra.mxu2 %v2116_v17  ;;  %v1894_v17 = vor.u32 %v2091_v14, %v1891_v16  ;;  %v2093_v28 = vld [vmem:[%s3394_s0 + $0x154] sm:$0xf]  ;;  %v1899_v29 = vld [vmem:[%s3394_s0 + $0x158] sm:$0xf0]  ;;  %v2067_v31 = vld [vmem:[%s3394_s0 + $0x84] sm:$0xf] }
  0x1b   :  { %v1795_v32 = vld [vmem:[%s3394_s0 + $0x88] sm:$0xf0]  ;;  %v1785_v34 = vld [vmem:[%s3394_s0 + $0x70] sm:$0xf]  ;;  %v2066_v35 = vld [vmem:[%s3394_s0 + $0x74] sm:$0xf0] }
  0x1c   :  { %v1786_v37 = vor.u32 %v2066_v35, %v1785_v34  ;;  %v1803_v40 = vld [vmem:[%s3394_s0 + $0x98] sm:$0xf0]  ;;  %v1793_v42 = vld [vmem:[%s3394_s0 + $0x80] sm:$0xf]  ;;  %v2096_v50 = vld [vmem:[%s3394_s0 + $0x164] sm:$0xf0] }
  0x1d   :  { %v1905_v49 = vld [vmem:[%s3394_s0 + $0x160] sm:$0xf]  ;;  %v2095_v53 = vld [vmem:[%s3394_s0 + $0x164] sm:$0xf]  ;;  %v1907_v54 = vld [vmem:[%s3394_s0 + $0x168] sm:$0xf0] }
  0x1e   :  { %689 = vmatpush.bf16.msra.mxu0 %v2115_v21  ;;  %2131 = vmatpush.bf16.msra.mxu2 %v2115_v21  ;;  %v1790_v21 = vor.u32 %v2065_v18, %v1787_v19  ;;  %v1906_v52 = vor.u32 %v2096_v50, %v1905_v49  ;;  %v2071_v58 = vld [vmem:[%s3394_s0 + $0xa4] sm:$0xf]  ;;  %v1811_v59 = vld [vmem:[%s3394_s0 + $0xa8] sm:$0xf0]  ;;  %v1801_v62 = vld [vmem:[%s3394_s0 + $0x90] sm:$0xf] }
  0x1f   :  { %2020 = vmatmul.msk.bf16.gmra.mxu1 %vm578_vm2, %v1742_v20  ;;  %v2224_v20 = vmov 0.0   ;;  %v1814_v61 = vor.u32 %v2071_v58, %v1811_v59  ;;  %v1913_v4 = vld [vmem:[%s3394_s0 + $0x170] sm:$0xf]  ;;  %v2097_v7 = vld [vmem:[%s3394_s0 + $0x174] sm:$0xf]  ;;  %s2228_s26 = smov [#allocation5]  }
  0x20   :  { %22 = vst.msk [vmem:[#allocation2] sm:$0xff] %vm21_vm3, %v2224_v20  ;;  %v2073_v19 = vld [vmem:[%s3394_s0 + $0xb4] sm:$0xf]  ;;  %v2099_v34 = vld [vmem:[%s3394_s0 + $0x184] sm:$0xf]  ;;  %s1696_s27 = sshll.u32 %s2228_s26, 4  ;;  %s1697_s27 = int_to_ptr.vmem [resolvable:$true] %s1696_s27 }
  0x21   :  { %690 = vmatmul.bf16.vlgmr.msra.gmra.mxu0 %v1730_v24  ;;  %770 = vmatmul.bf16.vlgmr.msra.gmra.mxu2 %v1858_v33  ;;  %23 = vst.msk [vmem:[#allocation2 + $0x8] sm:$0xff] %vm21_vm3, %v2224_v20  ;;  %v1778_v24 = vor.u32 %v2064_v23, %v1777_v22  ;;  %v1798_v33 = vor.u32 %v2067_v31, %v1795_v32  ;;  %v1923_v35 = vld [vmem:[%s3394_s0 + $0x188] sm:$0xf0]  ;;  %s1698_s30 = sshll.u32 %s3397_s3, 4  ;;  %vm1478_vm5 = vcmask 516096   ;;  %s2229_s5 = smov [#allocation7]   ;;  %s1699_s30 = int_to_ptr.hbm [resolvable:$true] %s1698_s30 }
  0x22   :  { %24 = vst.msk [vmem:[#allocation2 + $0x10] sm:$0xff] %vm21_vm3, %v2224_v20  ;;  %s1707_s6 = sshll.u32 %s2229_s5, 4  ;;  %s1709_s9 = sshll.u32 %s3398_s4, 4  ;;  %s1708_s6 = int_to_ptr.vmem [resolvable:$true] %s1707_s6  ;;  %s1710_s9 = int_to_ptr.hbm [resolvable:$true] %s1709_s9 }
  0x23   :  { %2037 = vmatmul.msk.bf16.gmra.mxu3 %vm578_vm2, %v1878_v57  ;;  %25 = vst.msk [vmem:[#allocation2 + $0x18] sm:$0xff] %vm21_vm3, %v2224_v20 }
  0x24   :  { %26 = vst.msk [vmem:[#allocation2 + $0x20] sm:$0xff] %vm21_vm3, %v2224_v20 }
  0x25   :  { %27 = vst.msk [vmem:[#allocation2 + $0x28] sm:$0xff] %vm21_vm3, %v2224_v20 }
  0x26   :  { %28 = vst.msk [vmem:[#allocation2 + $0x30] sm:$0xff] %vm21_vm3, %v2224_v20 }
  0x27   :  { %29 = vst.msk [vmem:[#allocation2 + $0x38] sm:$0xff] %vm21_vm3, %v2224_v20  ;;  %v86_v46 = vld [vmem:[#allocation2] sm:$0xff] }
  0x28   :  { %30 = vst.msk [vmem:[#allocation2 + $0x40] sm:$0xff] %vm21_vm3, %v2224_v20  ;;  %v87_v12 = vld [vmem:[#allocation2 + $0x8] sm:$0xff] }
  0x29   :  { %31 = vst.msk [vmem:[#allocation2 + $0x48] sm:$0xff] %vm21_vm3, %v2224_v20  ;;  %v88_v14 = vld [vmem:[#allocation2 + $0x10] sm:$0xff] }
  0x2a   :  { %32 = vst.msk [vmem:[#allocation2 + $0x50] sm:$0xff] %vm21_vm3, %v2224_v20 }
  0x2b   :  { %33 = vst.msk [vmem:[#allocation2 + $0x58] sm:$0xff] %vm21_vm3, %v2224_v20 }
  0x2c   :  { %34 = vst.msk [vmem:[#allocation2 + $0x60] sm:$0xff] %vm21_vm3, %v2224_v20  ;;  %v91_v59 = vld [vmem:[#allocation2 + $0x28] sm:$0xff] }
  0x2d   :  { %35 = vst.msk [vmem:[#allocation2 + $0x68] sm:$0xff] %vm21_vm3, %v2224_v20 }
  0x2e   :  { %36 = vst.msk [vmem:[#allocation2 + $0x70] sm:$0xff] %vm21_vm3, %v2224_v20 }
  0x2f   :  { %2021 = vmatmul.msk.bf16.gmra.mxu1 %vm578_vm2, %v1750_v27  ;;  %v1898_v27 = vor.u32 %v2094_v26, %v1897_v25  ;;  %37 = vst.msk [vmem:[#allocation2 + $0x78] sm:$0xff] %vm21_vm3, %v2224_v20  ;;  %v1809_v25 = vld [vmem:[%s3394_s0 + $0xa0] sm:$0xf]  ;;  %v2072_v26 = vld [vmem:[%s3394_s0 + $0xa4] sm:$0xf0] }
  0x30   :  { %38 = vst.msk [vmem:[#allocation2 + $0x80] sm:$0xff] %vm21_vm3, %v2224_v20 }
  0x31   :  { %695 = vmatmul.bf16.gmra.mxu0 %v1738_v30  ;;  %775 = vmatmul.bf16.gmra.mxu2 %v1866_v43  ;;  %v1902_v30 = vor.u32 %v2093_v28, %v1899_v29  ;;  %39 = vst.msk [vmem:[#allocation2 + $0x88] sm:$0xff] %vm21_vm3, %v2224_v20  ;;  %v2068_v43 = vld [vmem:[%s3394_s0 + $0x84] sm:$0xf0]  ;;  %v1810_v28 = vor.u32 %v2072_v26, %v1809_v25  ;;  %v2101_v25 = vld [vmem:[%s3394_s0 + $0x194] sm:$0xf] }
  0x32   :  { %40 = vst.msk [vmem:[#allocation2 + $0x90] sm:$0xff] %vm21_vm3, %v2224_v20  ;;  %v1794_v45 = vor.u32 %v2068_v43, %v1793_v42  ;;  %v1931_v26 = vld [vmem:[%s3394_s0 + $0x198] sm:$0xf0] }
  0x33   :  { %2038 = vmatmul.msk.bf16.gmra.mxu3 %vm578_vm2, %v1886_v5  ;;  %41 = vst.msk [vmem:[#allocation2 + $0x98] sm:$0xff] %vm21_vm3, %v2224_v20  ;;  %v2098_v5 = vld [vmem:[%s3394_s0 + $0x174] sm:$0xf0] }
  0x34   :  { %42 = vst.msk [vmem:[#allocation2 + $0xa0] sm:$0xff] %vm21_vm3, %v2224_v20  ;;  %v1914_v6 = vor.u32 %v2098_v5, %v1913_v4 }
  0x35   :  { %43 = vst.msk [vmem:[#allocation2 + $0xa8] sm:$0xff] %vm21_vm3, %v2224_v20 }
  0x36   :  { %44 = vst.msk [vmem:[#allocation2 + $0xb0] sm:$0xff] %vm21_vm3, %v2224_v20 }
  0x37   :  { %45 = vst.msk [vmem:[#allocation2 + $0xb8] sm:$0xff] %vm21_vm3, %v2224_v20 }
  0x38   :  { %46 = vst.msk [vmem:[#allocation2 + $0xc0] sm:$0xff] %vm21_vm3, %v2224_v20 }
  0x39   :  { %47 = vst.msk [vmem:[#allocation2 + $0xc8] sm:$0xff] %vm21_vm3, %v2224_v20 }
  0x3a   :  { %48 = vst.msk [vmem:[#allocation2 + $0xd0] sm:$0xff] %vm21_vm3, %v2224_v20 }
  0x3b   :  { %49 = vst.msk [vmem:[#allocation2 + $0xd8] sm:$0xff] %vm21_vm3, %v2224_v20 }
  0x3c   :  { %50 = vst.msk [vmem:[#allocation2 + $0xe0] sm:$0xff] %vm21_vm3, %v2224_v20 }
  0x3d   :  { %51 = vst.msk [vmem:[#allocation2 + $0xe8] sm:$0xff] %vm21_vm3, %v2224_v20 }
  0x3e   :  { %52 = vst.msk [vmem:[#allocation2 + $0xf0] sm:$0xff] %vm21_vm3, %v2224_v20 }
  0x3f   :  { %2022 = vmatmul.msk.bf16.gmra.mxu1 %vm578_vm2, %v1758_v36  ;;  %53 = vst.msk [vmem:[#allocation2 + $0xf8] sm:$0xff] %vm21_vm3, %v2224_v20 }
  0x40   :  { %54 = vst.msk [vmem:[#allocation2 + $0x100] sm:$0xff] %vm21_vm3, %v2224_v20 }
  0x41   :  { %700 = vmatmul.bf16.gmra.mxu0 %v1746_v39  ;;  %780 = vmatmul.bf16.gmra.mxu2 %v1874_v55  ;;  %v2069_v39 = vld [vmem:[%s3394_s0 + $0x94] sm:$0xf]  ;;  %55 = vst.msk [vmem:[#allocation2 + $0x108] sm:$0xff] %vm21_vm3, %v2224_v20  ;;  %v1910_v55 = vor.u32 %v2095_v53, %v1907_v54 }
  0x42   :  { %v1806_v41 = vor.u32 %v2069_v39, %v1803_v40  ;;  %56 = vst.msk [vmem:[#allocation2 + $0x110] sm:$0xff] %vm21_vm3, %v2224_v20 }
  0x43   :  { %2039 = vmatmul.msk.bf16.gmra.mxu3 %vm578_vm2, %v1894_v17  ;;  %57 = vst.msk [vmem:[#allocation2 + $0x118] sm:$0xff] %vm21_vm3, %v2224_v20 }
  0x44   :  { %58 = vst.msk [vmem:[#allocation2 + $0x120] sm:$0xff] %vm21_vm3, %v2224_v20 }
  0x45   :  { %59 = vst.msk [vmem:[#allocation2 + $0x128] sm:$0xff] %vm21_vm3, %v2224_v20 }
  0x46   :  { %60 = vst.msk [vmem:[#allocation2 + $0x130] sm:$0xff] %vm21_vm3, %v2224_v20 }
  0x47   :  { %61 = vst.msk [vmem:[#allocation2 + $0x138] sm:$0xff] %vm21_vm3, %v2224_v20 }
  0x48   :  { %62 = vst.msk [vmem:[#allocation2 + $0x140] sm:$0xff] %vm21_vm3, %v2224_v20 }
  0x49   :  { %63 = vst.msk [vmem:[#allocation2 + $0x148] sm:$0xff] %vm21_vm3, %v2224_v20 }
  0x4a   :  { %64 = vst.msk [vmem:[#allocation2 + $0x150] sm:$0xff] %vm21_vm3, %v2224_v20 }
  0x4b   :  { %65 = vst.msk [vmem:[#allocation2 + $0x158] sm:$0xff] %vm21_vm3, %v2224_v20 }
  0x4c   :  { %66 = vst.msk [vmem:[#allocation2 + $0x160] sm:$0xff] %vm21_vm3, %v2224_v20 }
  0x4d   :  { %67 = vst.msk [vmem:[#allocation2 + $0x168] sm:$0xff] %vm21_vm3, %v2224_v20 }
  0x4e   :  { %68 = vst.msk [vmem:[#allocation2 + $0x170] sm:$0xff] %vm21_vm3, %v2224_v20 }
  0x4f   :  { %2023 = vmatmul.msk.bf16.gmra.mxu1 %vm578_vm2, %v1766_v48  ;;  %69 = vst.msk [vmem:[#allocation2 + $0x178] sm:$0xff] %vm21_vm3, %v2224_v20 }
  0x50   :  { %70 = vst.msk [vmem:[#allocation2 + $0x180] sm:$0xff] %vm21_vm3, %v2224_v20 }
  0x51   :  { %705 = vmatmul.bf16.gmra.mxu0 %v1754_v51  ;;  %785 = vmatmul.bf16.gmra.mxu2 %v1882_v3  ;;  %71 = vst.msk [vmem:[#allocation2 + $0x188] sm:$0xff] %vm21_vm3, %v2224_v20 }
  0x52   :  { %72 = vst.msk [vmem:[#allocation2 + $0x190] sm:$0xff] %vm21_vm3, %v2224_v20 }
  0x53   :  { %2040 = vmatmul.msk.bf16.gmra.mxu3 %vm578_vm2, %v1902_v30  ;;  %73 = vst.msk [vmem:[#allocation2 + $0x198] sm:$0xff] %vm21_vm3, %v2224_v20  ;;  %v1921_v30 = vld [vmem:[%s3394_s0 + $0x180] sm:$0xf] }
  0x54   :  { %74 = vst.msk [vmem:[#allocation2 + $0x1a0] sm:$0xff] %vm21_vm3, %v2224_v20 }
  0x55   :  { %75 = vst.msk [vmem:[#allocation2 + $0x1a8] sm:$0xff] %vm21_vm3, %v2224_v20 }
  0x56   :  { %76 = vst.msk [vmem:[#allocation2 + $0x1b0] sm:$0xff] %vm21_vm3, %v2224_v20 }
  0x57   :  { %77 = vst.msk [vmem:[#allocation2 + $0x1b8] sm:$0xff] %vm21_vm3, %v2224_v20 }
  0x58   :  { %78 = vst.msk [vmem:[#allocation2 + $0x1c0] sm:$0xff] %vm21_vm3, %v2224_v20 }
  0x59   :  { %79 = vst.msk [vmem:[#allocation2 + $0x1c8] sm:$0xff] %vm21_vm3, %v2224_v20 }
  0x5a   :  { %80 = vst.msk [vmem:[#allocation2 + $0x1d0] sm:$0xff] %vm21_vm3, %v2224_v20 }
  0x5b   :  { %81 = vst.msk [vmem:[#allocation2 + $0x1d8] sm:$0xff] %vm21_vm3, %v2224_v20 }
  0x5c   :  { %82 = vst.msk [vmem:[#allocation2 + $0x1e0] sm:$0xff] %vm21_vm3, %v2224_v20 }
  0x5d   :  { %83 = vst.msk [vmem:[#allocation2 + $0x1e8] sm:$0xff] %vm21_vm3, %v2224_v20 }
  0x5e   :  { %84 = vst.msk [vmem:[#allocation2 + $0x1f0] sm:$0xff] %vm21_vm3, %v2224_v20 }
  0x5f   :  { %2024 = vmatmul.msk.bf16.gmra.mxu1 %vm578_vm2, %v1774_v60  ;;  %85 = vst.msk [vmem:[#allocation2 + $0x1f8] sm:$0xff] %vm21_vm3, %v2224_v20  ;;  %v90_v20 = vld [vmem:[#allocation2 + $0x20] sm:$0xff] }
  0x61   :  { %710 = vmatmul.bf16.gmra.mxu0 %v1762_v63  ;;  %790 = vmatmul.bf16.gmra.mxu2 %v1890_v15  ;;  %v2070_v63 = vld [vmem:[%s3394_s0 + $0x94] sm:$0xf0] }
  0x62   :  { %v1802_v2 = vor.u32 %v2070_v63, %v1801_v62  ;;  %v89_v15 = vld [vmem:[#allocation2 + $0x18] sm:$0xff] }
  0x63   :  { %2041 = vmatmul.msk.bf16.gmra.mxu3 %vm578_vm2, %v1910_v55 }
  0x6f   :  { %2025 = vmatmul.msk.bf16.gmra.mxu1 %vm578_vm2, %v1782_v8  ;;  %v1915_v8 = vld [vmem:[%s3394_s0 + $0x178] sm:$0xf0] }
  0x70   :  { %v1918_v9 = vor.u32 %v2097_v7, %v1915_v8  ;;  %v1817_v8 = vld [vmem:[%s3394_s0 + $0xb0] sm:$0xf] }
  0x71   :  { %715 = vmatmul.bf16.gmra.mxu0 %v1770_v11  ;;  %795 = vmatmul.bf16.gmra.mxu2 %v1898_v27 }
  0x73   :  { %2042 = vmatmul.msk.bf16.gmra.mxu3 %vm578_vm2, %v1918_v9  ;;  %v2074_v9 = vld [vmem:[%s3394_s0 + $0xb4] sm:$0xf0] }
  0x7f   :  { %2026 = vmatmul.msk.bf16.gmra.mxu1 %vm578_vm2, %v1790_v21  ;;  %v1819_v21 = vld [vmem:[%s3394_s0 + $0xb8] sm:$0xf0] }
  0x81   :  { %720 = vmatmul.bf16.gmra.mxu0 %v1778_v24  ;;  %800 = vmatmul.bf16.gmra.mxu2 %v1906_v52  ;;  %v1822_v24 = vor.u32 %v2073_v19, %v1819_v21 }
  0x8c   :  { %v860_v36 = vpop.f32.mrf.mxu1 }
  0x8f   :  { %2027 = vmatmul.msk.bf16.gmra.mxu1 %vm578_vm2, %v1798_v33  ;;  %v2100_v33 = vld [vmem:[%s3394_s0 + $0x184] sm:$0xf0] }
  0x91   :  { %725 = vmatmul.bf16.gmra.mxu0 %v1786_v37  ;;  %805 = vmatmul.bf16.gmra.mxu2 %v1914_v6  ;;  %v1926_v37 = vor.u32 %v2099_v34, %v1923_v35 }
  0x93   :  { %2043 = vmatmul.msk.bf16.gmra.mxu3 %vm578_vm2, %v1926_v37  ;;  %v93_v37 = vld [vmem:[#allocation2 + $0x38] sm:$0xff] }
  0x94   :  { %v2519_v38 = vpop.f32.mrf.mxu1 }
  0x9c   :  { %v2549_v44 = vpop.f32.mrf.mxu1 }
  0x9e   :  { %v691_v47 = vpop.f32.mrf.mxu0 }
  0x9f   :  { %2028 = vmatmul.msk.bf16.gmra.mxu1 %vm578_vm2, %v1806_v41  ;;  %v861_v48 = vadd.f32 %v860_v36, %v691_v47  ;;  %v1922_v36 = vor.u32 %v2100_v33, %v1921_v30 }
  0xa1   :  { %v1020_v51 = vadd.f32 %v861_v48, %v86_v46  ;;  %730 = vmatmul.bf16.gmra.mxu0 %v1794_v45  ;;  %810 = vmatmul.bf16.gmra.mxu2 %v1922_v36 }
  0xa3   :  { %1085 = vst.msk [vmem:[#allocation2] sm:$0xff] %vm21_vm3, %v1020_v51 }
  0xa4   :  { %v867_v56 = vpop.f32.mrf.mxu1  ;;  %v2710_v62 = vpop.f32.mrf.mxu2 }
  0xa6   :  { %v693_v57 = vpop.f32.mrf.mxu0 }
  0xa7   :  { %v863_v10 = vadd.f32 %v2519_v38, %v693_v57 }
  0xa9   :  { %v1021_v17 = vadd.f32 %v863_v10, %v87_v12 }
  0xaa   :  { %v2600_v60 = vld [vmem:[#allocation2] sm:$0xff] }
  0xab   :  { %v1216_v0 = vpack.c.bf16 %v2600_v60, %v2600_v60  ;;  %1086 = vst.msk [vmem:[#allocation2 + $0x8] sm:$0xff] %vm21_vm3, %v1021_v17  ;;  %v1480_v31 = vmul.f32 %v2600_v60, %v2600_v60  ;;  %v1345_v39 = vsel %vm21_vm3, %v2600_v60, 0.0 }
  0xac   :  { %v870_v1 = vpop.f32.mrf.mxu1  ;;  %v2729_v21 = vpop.f32.mrf.mxu2 }
  0xad   :  { %1281 = vst.msk [vmem:[#allocation3] sm:$0xf] %vm1280_vm4, %v1216_v0  ;;  %v1544_v41 = vsel %vm21_vm3, %v1480_v31, 0.0 }
  0xae   :  { %v696_v3 = vpop.f32.mrf.mxu0 }
  0xaf   :  { %2029 = vmatmul.msk.bf16.gmra.mxu1 %vm578_vm2, %v1814_v61  ;;  %v866_v13 = vadd.f32 %v2549_v44, %v696_v3  ;;  %v2075_v61 = vld [vmem:[%s3394_s0 + $0xc4] sm:$0xf] }
  0xb1   :  { %735 = vmatmul.bf16.gmra.mxu0 %v1802_v2  ;;  %v1022_v22 = vadd.f32 %v866_v13, %v88_v14 }
  0xb2   :  { %v1153_v40 = vld [vmem:[#allocation2 + $0x8] sm:$0xff] }
  0xb3   :  { %1087 = vst.msk [vmem:[#allocation2 + $0x10] sm:$0xff] %vm21_vm3, %v1022_v22  ;;  %v1217_v42 = vpack.c.bf16 %v1153_v40, %v1153_v40  ;;  %v1346_v43 = vsel %vm21_vm3, %v1153_v40, 0.0  ;;  %v1481_v44 = vmul.f32 %v1153_v40, %v1153_v40  ;;  %v1929_v22 = vld [vmem:[%s3394_s0 + $0x190] sm:$0xf] }
  0xb4   :  { %v2643_v11 = vpop.f32.mrf.mxu1  ;;  %v1347_v47 = vadd.f32 %v1346_v43, %v1345_v39  ;;  %v776_v39 = vpop.f32.mrf.mxu2  ;;  %v120_v43 = vld [vmem:[#allocation2 + $0x110] sm:$0xff] }
  0xb5   :  { %1282 = vst.msk [vmem:[#allocation3 + $0x4] sm:$0xf] %vm1280_vm4, %v1217_v42  ;;  %v1545_v52 = vsel %vm21_vm3, %v1481_v44, 0.0  ;;  %v1835_v42 = vld [vmem:[%s3394_s0 + $0xd8] sm:$0xf0]  ;;  %v945_v44 = vpop.f32.mrf.mxu3 }
  0xb6   :  { %v698_v16 = vpop.f32.mrf.mxu0 }
  0xb7   :  { %v868_v18 = vadd.f32 %v867_v56, %v698_v16  ;;  %v1546_v56 = vadd.f32 %v1545_v52, %v1544_v41  ;;  %v1818_v16 = vor.u32 %v2074_v9, %v1817_v8  ;;  %v2077_v41 = vld [vmem:[%s3394_s0 + $0xd4] sm:$0xf]  ;;  %v1939_v8 = vld [vmem:[%s3394_s0 + $0x1a8] sm:$0xf0] }
  0xb9   :  { %v1023_v23 = vadd.f32 %v868_v18, %v89_v15  ;;  %v92_v18 = vld [vmem:[#allocation2 + $0x30] sm:$0xff] }
  0xba   :  { %v1154_v45 = vld [vmem:[#allocation2 + $0x10] sm:$0xff] }
  0xbb   :  { %1088 = vst.msk [vmem:[#allocation2 + $0x18] sm:$0xff] %vm21_vm3, %v1023_v23  ;;  %v1218_v48 = vpack.c.bf16 %v1154_v45, %v1154_v45  ;;  %v1348_v49 = vsel %vm21_vm3, %v1154_v45, 0.0  ;;  %v1482_v50 = vmul.f32 %v1154_v45, %v1154_v45  ;;  %v946_v45 = vadd.f32 %v945_v44, %v776_v39 }
  0xbc   :  { %v2674_v27 = vpop.f32.mrf.mxu1  ;;  %v1349_v57 = vadd.f32 %v1348_v49, %v1347_v47  ;;  %v1838_v49 = vor.u32 %v2077_v41, %v1835_v42 }
  0xbd   :  { %1283 = vst.msk [vmem:[#allocation3 + $0x8] sm:$0xf] %vm1280_vm4, %v1218_v48  ;;  %v1547_v58 = vsel %vm21_vm3, %v1482_v50, 0.0  ;;  %v1825_v50 = vld [vmem:[%s3394_s0 + $0xc0] sm:$0xf] }
  0xbe   :  { %v701_v29 = vpop.f32.mrf.mxu0  ;;  %v1548_v2 = vadd.f32 %v1547_v58, %v1546_v56 }
  0xbf   :  { %2030 = vmatmul.msk.bf16.gmra.mxu1 %vm578_vm2, %v1822_v24  ;;  %v871_v32 = vadd.f32 %v870_v1, %v701_v29  ;;  %v1827_v1 = vld [vmem:[%s3394_s0 + $0xc8] sm:$0xf0]  ;;  %v2102_v24 = vld [vmem:[%s3394_s0 + $0x194] sm:$0xf0] }
  0xc0   :  { %v1830_v7 = vor.u32 %v2075_v61, %v1827_v1 }
  0xc1   :  { %v1024_v38 = vadd.f32 %v871_v32, %v90_v20  ;;  %740 = vmatmul.bf16.gmra.mxu0 %v1810_v28  ;;  %v1930_v28 = vor.u32 %v2102_v24, %v1929_v22  ;;  %v1934_v20 = vor.u32 %v2101_v25, %v1931_v26  ;;  %v95_v24 = vld [vmem:[#allocation2 + $0x48] sm:$0xff] }
  0xc2   :  { %v1155_v51 = vld [vmem:[#allocation2 + $0x18] sm:$0xff] }
  0xc3   :  { %1089 = vst.msk [vmem:[#allocation2 + $0x20] sm:$0xff] %vm21_vm3, %v1024_v38  ;;  %v1219_v53 = vpack.c.bf16 %v1155_v51, %v1155_v51  ;;  %v1350_v54 = vsel %vm21_vm3, %v1155_v51, 0.0  ;;  %v1483_v55 = vmul.f32 %v1155_v51, %v1155_v51  ;;  %815 = vmatmul.bf16.gmra.mxu2 %v1930_v28  ;;  %2044 = vmatmul.msk.bf16.gmra.mxu3 %vm578_vm2, %v1934_v20  ;;  %v2079_v20 = vld [vmem:[%s3394_s0 + $0xe4] sm:$0xf] }
  0xc4   :  { %v2698_v46 = vpop.f32.mrf.mxu1  ;;  %v1351_v3 = vadd.f32 %v1350_v54, %v1349_v57  ;;  %v1054_v51 = vadd.f32 %v946_v45, %v120_v43 }
  0xc5   :  { %1284 = vst.msk [vmem:[#allocation3 + $0xc] sm:$0xf] %vm1280_vm4, %v1219_v53  ;;  %v1549_v63 = vsel %vm21_vm3, %v1483_v55, 0.0 }
  0xc6   :  { %v703_v60 = vpop.f32.mrf.mxu0  ;;  %v1550_v5 = vadd.f32 %v1549_v63, %v1548_v2  ;;  %1119 = vst.msk [vmem:[#allocation2 + $0x110] sm:$0xff] %vm21_vm3, %v1054_v51  ;;  %v778_v63 = vpop.f32.mrf.mxu2 }
  0xc7   :  { %v873_v0 = vadd.f32 %v2643_v11, %v703_v60  ;;  %v94_v60 = vld [vmem:[#allocation2 + $0x40] sm:$0xff]  ;;  %v947_v2 = vpop.f32.mrf.mxu3 }
  0xc9   :  { %v1025_v4 = vadd.f32 %v873_v0, %v91_v59  ;;  %v121_v0 = vld [vmem:[#allocation2 + $0x118] sm:$0xff] }
  0xca   :  { %v1156_v6 = vld [vmem:[#allocation2 + $0x20] sm:$0xff] }
  0xcb   :  { %v1220_v10 = vpack.c.bf16 %v1156_v6, %v1156_v6  ;;  %v1352_v11 = vsel %vm21_vm3, %v1156_v6, 0.0  ;;  %v1484_v12 = vmul.f32 %v1156_v6, %v1156_v6  ;;  %1090 = vst.msk [vmem:[#allocation2 + $0x28] sm:$0xff] %vm21_vm3, %v1025_v4  ;;  %v2104_v4 = vld [vmem:[%s3394_s0 + $0x1a4] sm:$0xf0]  ;;  %v948_v6 = vadd.f32 %v947_v2, %v778_v63 }
  0xcc   :  { %v880_v13 = vpop.f32.mrf.mxu1  ;;  %v1353_v14 = vadd.f32 %v1352_v11, %v1351_v3  ;;  %v1937_v3 = vld [vmem:[%s3394_s0 + $0x1a0] sm:$0xf] }
  0xcd   :  { %1285 = vst.msk [vmem:[#allocation3 + $0x10] sm:$0xf] %vm1280_vm4, %v1220_v10  ;;  %v1551_v15 = vsel %vm21_vm3, %v1484_v12, 0.0  ;;  %v1055_v12 = vadd.f32 %v948_v6, %v121_v0 }
  0xce   :  { %v1552_v17 = vadd.f32 %v1551_v15, %v1550_v5  ;;  %v706_v19 = vpop.f32.mrf.mxu0  ;;  %v2103_v5 = vld [vmem:[%s3394_s0 + $0x1a4] sm:$0xf]  ;;  %v781_v26 = vpop.f32.mrf.mxu2 }
  0xcf   :  { %2031 = vmatmul.msk.bf16.gmra.mxu1 %vm578_vm2, %v1830_v7  ;;  %v876_v23 = vadd.f32 %v2674_v27, %v706_v19  ;;  %v1938_v7 = vor.u32 %v2104_v4, %v1937_v3  ;;  %v1942_v10 = vor.u32 %v2103_v5, %v1939_v8  ;;  %1120 = vst.msk [vmem:[#allocation2 + $0x118] sm:$0xff] %vm21_vm3, %v1055_v12 }
  0xd1   :  { %v1026_v29 = vadd.f32 %v876_v23, %v92_v18  ;;  %745 = vmatmul.bf16.gmra.mxu0 %v1818_v16 }
  0xd2   :  { %v1157_v30 = vld [vmem:[#allocation2 + $0x28] sm:$0xff] }
  0xd3   :  { %v1221_v31 = vpack.c.bf16 %v1157_v30, %v1157_v30  ;;  %v1354_v27 = vsel %vm21_vm3, %v1157_v30, 0.0  ;;  %v1485_v32 = vmul.f32 %v1157_v30, %v1157_v30  ;;  %1091 = vst.msk [vmem:[#allocation2 + $0x30] sm:$0xff] %vm21_vm3, %v1026_v29  ;;  %820 = vmatmul.bf16.gmra.mxu2 %v1938_v7  ;;  %2045 = vmatmul.msk.bf16.gmra.mxu3 %vm578_vm2, %v1942_v10  ;;  %v1843_v29 = vld [vmem:[%s3394_s0 + $0xe8] sm:$0xf0]  ;;  %v122_v30 = vld [vmem:[#allocation2 + $0x120] sm:$0xff]  ;;  %v97_v10 = vld [vmem:[#allocation2 + $0x58] sm:$0xff] }
  0xd4   :  { %v2746_v33 = vpop.f32.mrf.mxu1  ;;  %v1355_v34 = vadd.f32 %v1354_v27, %v1353_v14 }
  0xd5   :  { %1286 = vst.msk [vmem:[#allocation3 + $0x14] sm:$0xf] %vm1280_vm4, %v1221_v31  ;;  %v1553_v35 = vsel %vm21_vm3, %v1485_v32, 0.0  ;;  %v950_v31 = vpop.f32.mrf.mxu3 }
  0xd6   :  { %v1554_v36 = vadd.f32 %v1553_v35, %v1552_v17  ;;  %v708_v38 = vpop.f32.mrf.mxu0  ;;  %v1186_v17 = vld [vmem:[#allocation2 + $0x110] sm:$0xff]  ;;  %v951_v27 = vadd.f32 %v950_v31, %v781_v26  ;;  %v1846_v35 = vor.u32 %v2079_v20, %v1843_v29  ;;  %v1187_v42 = vld [vmem:[#allocation2 + $0x118] sm:$0xff] }
  0xd7   :  { %v878_v40 = vadd.f32 %v2698_v46, %v708_v38  ;;  %v2076_v46 = vld [vmem:[%s3394_s0 + $0xc4] sm:$0xf0]  ;;  %v1250_v19 = vpack.c.bf16 %v1186_v17, %v1186_v17  ;;  %v1251_v44 = vpack.c.bf16 %v1187_v42, %v1187_v42  ;;  %v124_v17 = vld [vmem:[#allocation2 + $0x130] sm:$0xff] }
  0xd8   :  { %v1826_v58 = vor.u32 %v2076_v46, %v1825_v50  ;;  %v783_v46 = vpop.f32.mrf.mxu2 }
  0xd9   :  { %v1027_v47 = vadd.f32 %v878_v40, %v93_v37  ;;  %1315 = vst.msk [vmem:[#allocation3 + $0x88] sm:$0xf] %vm1280_vm4, %v1250_v19  ;;  %v1056_v37 = vadd.f32 %v951_v27, %v122_v30 }
  0xda   :  { %v1158_v48 = vld [vmem:[#allocation2 + $0x30] sm:$0xff]  ;;  %1316 = vst.msk [vmem:[#allocation3 + $0x8c] sm:$0xf] %vm1280_vm4, %v1251_v44  ;;  %v2108_v44 = vld [vmem:[%s3394_s0 + $0x1c4] sm:$0xf0] }
  0xdb   :  { %v1222_v52 = vpack.c.bf16 %v1158_v48, %v1158_v48  ;;  %v1356_v53 = vsel %vm21_vm3, %v1158_v48, 0.0  ;;  %v1486_v54 = vmul.f32 %v1158_v48, %v1158_v48  ;;  %1092 = vst.msk [vmem:[#allocation2 + $0x38] sm:$0xff] %vm21_vm3, %v1027_v47 }
  0xdc   :  { %v2766_v55 = vpop.f32.mrf.mxu1  ;;  %v1357_v56 = vadd.f32 %v1356_v53, %v1355_v34  ;;  %1121 = vst.msk [vmem:[#allocation2 + $0x120] sm:$0xff] %vm21_vm3, %v1056_v37 }
  0xdd   :  { %1287 = vst.msk [vmem:[#allocation3 + $0x18] sm:$0xf] %vm1280_vm4, %v1222_v52  ;;  %v1555_v57 = vsel %vm21_vm3, %v1486_v54, 0.0  ;;  %v123_v52 = vld [vmem:[#allocation2 + $0x128] sm:$0xff]  ;;  %v952_v53 = vpop.f32.mrf.mxu3  ;;  %v1945_v54 = vld [vmem:[%s3394_s0 + $0x1b0] sm:$0xf] }
  0xde   :  { %v1556_v59 = vadd.f32 %v1555_v57, %v1554_v36  ;;  %v711_v61 = vpop.f32.mrf.mxu0  ;;  %v1833_v36 = vld [vmem:[%s3394_s0 + $0xd0] sm:$0xf]  ;;  %v953_v57 = vadd.f32 %v952_v53, %v783_v46 }
  0xdf   :  { %2032 = vmatmul.msk.bf16.gmra.mxu1 %vm578_vm2, %v1838_v49  ;;  %v881_v1 = vadd.f32 %v880_v13, %v711_v61  ;;  %v96_v49 = vld [vmem:[#allocation2 + $0x50] sm:$0xff] }
  0xe0   :  { %v1057_v0 = vadd.f32 %v953_v57, %v123_v52  ;;  %v786_v12 = vpop.f32.mrf.mxu2 }
  0xe1   :  { %v1028_v9 = vadd.f32 %v881_v1, %v94_v60  ;;  %750 = vmatmul.bf16.gmra.mxu0 %v1826_v58 }
  0xe2   :  { %v1159_v11 = vld [vmem:[#allocation2 + $0x38] sm:$0xff]  ;;  %1122 = vst.msk [vmem:[#allocation2 + $0x128] sm:$0xff] %vm21_vm3, %v1057_v0 }
  0xe3   :  { %v1223_v13 = vpack.c.bf16 %v1159_v11, %v1159_v11  ;;  %v1358_v14 = vsel %vm21_vm3, %v1159_v11, 0.0  ;;  %v1487_v15 = vmul.f32 %v1159_v11, %v1159_v11  ;;  %1093 = vst.msk [vmem:[#allocation2 + $0x40] sm:$0xff] %vm21_vm3, %v1028_v9  ;;  %v1188_v5 = vld [vmem:[#allocation2 + $0x120] sm:$0xff] }
  0xe4   :  { %v2786_v16 = vpop.f32.mrf.mxu1  ;;  %v1359_v18 = vadd.f32 %v1358_v14, %v1357_v56  ;;  %v2106_v56 = vld [vmem:[%s3394_s0 + $0x1b4] sm:$0xf0]  ;;  %v1252_v7 = vpack.c.bf16 %v1188_v5, %v1188_v5  ;;  %v2081_v14 = vld [vmem:[%s3394_s0 + $0xf4] sm:$0xf]  ;;  %v126_v5 = vld [vmem:[#allocation2 + $0x140] sm:$0xff] }
  0xe5   :  { %1288 = vst.msk [vmem:[#allocation3 + $0x1c] sm:$0xf] %vm1280_vm4, %v1223_v13  ;;  %v1557_v22 = vsel %vm21_vm3, %v1487_v15, 0.0  ;;  %v1946_v58 = vor.u32 %v2106_v56, %v1945_v54  ;;  %v1851_v15 = vld [vmem:[%s3394_s0 + $0xf8] sm:$0xf0] }
  0xe6   :  { %v1558_v23 = vadd.f32 %v1557_v22, %v1556_v59  ;;  %v713_v25 = vpop.f32.mrf.mxu0  ;;  %v2105_v59 = vld [vmem:[%s3394_s0 + $0x1b4] sm:$0xf]  ;;  %1317 = vst.msk [vmem:[#allocation3 + $0x90] sm:$0xf] %vm1280_vm4, %v1252_v7 }
  0xe7   :  { %v883_v28 = vadd.f32 %v2746_v33, %v713_v25  ;;  %v2078_v33 = vld [vmem:[%s3394_s0 + $0xd4] sm:$0xf0]  ;;  %825 = vmatmul.bf16.gmra.mxu2 %v1946_v58  ;;  %v1841_v25 = vld [vmem:[%s3394_s0 + $0xe0] sm:$0xf] }
  0xe8   :  { %v1834_v47 = vor.u32 %v2078_v33, %v1833_v36  ;;  %v98_v33 = vld [vmem:[#allocation2 + $0x60] sm:$0xff] }
  0xe9   :  { %v1029_v32 = vadd.f32 %v883_v28, %v95_v24  ;;  %v1854_v24 = vor.u32 %v2081_v14, %v1851_v15  ;;  %v1189_v31 = vld [vmem:[#allocation2 + $0x128] sm:$0xff] }
  0xea   :  { %v1160_v34 = vld [vmem:[#allocation2 + $0x40] sm:$0xff] }
  0xeb   :  { %v1224_v38 = vpack.c.bf16 %v1160_v34, %v1160_v34  ;;  %v1360_v39 = vsel %vm21_vm3, %v1160_v34, 0.0  ;;  %v1488_v40 = vmul.f32 %v1160_v34, %v1160_v34  ;;  %1094 = vst.msk [vmem:[#allocation2 + $0x48] sm:$0xff] %vm21_vm3, %v1029_v32  ;;  %v1253_v32 = vpack.c.bf16 %v1189_v31, %v1189_v31 }
  0xec   :  { %v2808_v41 = vpop.f32.mrf.mxu1  ;;  %v1361_v43 = vadd.f32 %v1360_v39, %v1359_v18  ;;  %v955_v18 = vpop.f32.mrf.mxu3 }
  0xed   :  { %1289 = vst.msk [vmem:[#allocation3 + $0x20] sm:$0xf] %vm1280_vm4, %v1224_v38  ;;  %v1559_v45 = vsel %vm21_vm3, %v1488_v40, 0.0  ;;  %v956_v19 = vadd.f32 %v955_v18, %v786_v12  ;;  %v788_v38 = vpop.f32.mrf.mxu2  ;;  %v125_v40 = vld [vmem:[#allocation2 + $0x138] sm:$0xff] }
  0xee   :  { %v1560_v48 = vadd.f32 %v1559_v45, %v1558_v23  ;;  %v716_v50 = vpop.f32.mrf.mxu0  ;;  %1318 = vst.msk [vmem:[#allocation3 + $0x94] sm:$0xf] %vm1280_vm4, %v1253_v32  ;;  %v2110_v32 = vld [vmem:[%s3394_s0 + $0x1d4] sm:$0xf0] }
  0xef   :  { %2033 = vmatmul.msk.bf16.gmra.mxu1 %vm578_vm2, %v1846_v35  ;;  %v886_v51 = vadd.f32 %v2766_v55, %v716_v50  ;;  %v1947_v55 = vld [vmem:[%s3394_s0 + $0x1b8] sm:$0xf0]  ;;  %v1058_v26 = vadd.f32 %v956_v19, %v124_v17 }
  0xf0   :  { %v1950_v61 = vor.u32 %v2105_v59, %v1947_v55 }
  0xf1   :  { %v1030_v60 = vadd.f32 %v886_v51, %v96_v49  ;;  %755 = vmatmul.bf16.gmra.mxu0 %v1834_v47  ;;  %1123 = vst.msk [vmem:[#allocation2 + $0x130] sm:$0xff] %vm21_vm3, %v1058_v26 }
  0xf2   :  { %v1161_v63 = vld [vmem:[#allocation2 + $0x48] sm:$0xff]  ;;  %2046 = vmatmul.msk.bf16.gmra.mxu3 %vm578_vm2, %v1950_v61 }
  0xf3   :  { %v1225_v1 = vpack.c.bf16 %v1161_v63, %v1161_v63  ;;  %v1362_v2 = vsel %vm21_vm3, %v1161_v63, 0.0  ;;  %v1489_v3 = vmul.f32 %v1161_v63, %v1161_v63  ;;  %1095 = vst.msk [vmem:[#allocation2 + $0x50] sm:$0xff] %vm21_vm3, %v1030_v60  ;;  %v99_v61 = vld [vmem:[#allocation2 + $0x68] sm:$0xff] }
  0xf4   :  { %v2830_v4 = vpop.f32.mrf.mxu1  ;;  %v1363_v6 = vadd.f32 %v1362_v2, %v1361_v43  ;;  %v957_v42 = vpop.f32.mrf.mxu3  ;;  %v1953_v43 = vld [vmem:[%s3394_s0 + $0x1c0] sm:$0xf]  ;;  %v2083_v2 = vld [vmem:[%s3394_s0 + $0x104] sm:$0xf] }
  0xf5   :  { %1290 = vst.msk [vmem:[#allocation3 + $0x24] sm:$0xf] %vm1280_vm4, %v1225_v1  ;;  %v1561_v8 = vsel %vm21_vm3, %v1489_v3, 0.0  ;;  %v958_v45 = vadd.f32 %v957_v42, %v788_v38  ;;  %v1954_v47 = vor.u32 %v2108_v44, %v1953_v43  ;;  %v791_v0 = vpop.f32.mrf.mxu2  ;;  %v1859_v3 = vld [vmem:[%s3394_s0 + $0x108] sm:$0xf0] }
  0xf6   :  { %v1562_v9 = vadd.f32 %v1561_v8, %v1560_v48  ;;  %v718_v11 = vpop.f32.mrf.mxu0  ;;  %v2107_v48 = vld [vmem:[%s3394_s0 + $0x1c4] sm:$0xf] }
  0xf7   :  { %v888_v13 = vadd.f32 %v2786_v16, %v718_v11  ;;  %v2080_v16 = vld [vmem:[%s3394_s0 + $0xe4] sm:$0xf0]  ;;  %v1059_v51 = vadd.f32 %v958_v45, %v125_v40  ;;  %830 = vmatmul.bf16.gmra.mxu2 %v1954_v47  ;;  %v1849_v11 = vld [vmem:[%s3394_s0 + $0xf0] sm:$0xf] }
  0xf8   :  { %v1842_v35 = vor.u32 %v2080_v16, %v1841_v25  ;;  %v1190_v57 = vld [vmem:[#allocation2 + $0x130] sm:$0xff] }
  0xf9   :  { %v1031_v22 = vadd.f32 %v888_v13, %v97_v10  ;;  %v1254_v59 = vpack.c.bf16 %v1190_v57, %v1190_v57  ;;  %1124 = vst.msk [vmem:[#allocation2 + $0x138] sm:$0xff] %vm21_vm3, %v1059_v51  ;;  %v1862_v10 = vor.u32 %v2083_v2, %v1859_v3  ;;  %v100_v16 = vld [vmem:[#allocation2 + $0x70] sm:$0xff] }
  0xfa   :  { %v1162_v23 = vld [vmem:[#allocation2 + $0x50] sm:$0xff] }
  0xfb   :  { %v1226_v28 = vpack.c.bf16 %v1162_v23, %v1162_v23  ;;  %v1364_v20 = vsel %vm21_vm3, %v1162_v23, 0.0  ;;  %v1490_v29 = vmul.f32 %v1162_v23, %v1162_v23  ;;  %1096 = vst.msk [vmem:[#allocation2 + $0x58] sm:$0xff] %vm21_vm3, %v1031_v22 }
  0xfc   :  { %v2852_v30 = vpop.f32.mrf.mxu1  ;;  %v1365_v27 = vadd.f32 %v1364_v20, %v1363_v6  ;;  %1319 = vst.msk [vmem:[#allocation3 + $0x98] sm:$0xf] %vm1280_vm4, %v1254_v59  ;;  %v960_v6 = vpop.f32.mrf.mxu3  ;;  %v127_v20 = vld [vmem:[#allocation2 + $0x148] sm:$0xff] }
  0xfd   :  { %1291 = vst.msk [vmem:[#allocation3 + $0x28] sm:$0xf] %vm1280_vm4, %v1226_v28  ;;  %v1563_v34 = vsel %vm21_vm3, %v1490_v29, 0.0  ;;  %v961_v7 = vadd.f32 %v960_v6, %v791_v0  ;;  %v793_v28 = vpop.f32.mrf.mxu2  ;;  %v1961_v29 = vld [vmem:[%s3394_s0 + $0x1d0] sm:$0xf]  ;;  %v102_v6 = vld [vmem:[#allocation2 + $0x80] sm:$0xff] }
  0xfe   :  { %v1564_v36 = vadd.f32 %v1563_v34, %v1562_v9  ;;  %v721_v37 = vpop.f32.mrf.mxu0  ;;  %v2109_v34 = vld [vmem:[%s3394_s0 + $0x1d4] sm:$0xf] }
  0xff   :  { %2034 = vmatmul.msk.bf16.gmra.mxu1 %vm578_vm2, %v1854_v24  ;;  %v891_v39 = vadd.f32 %v2808_v41, %v721_v37  ;;  %v1955_v41 = vld [vmem:[%s3394_s0 + $0x1c8] sm:$0xf0]  ;;  %v1060_v12 = vadd.f32 %v961_v7, %v126_v5 }
 0x100   :  { %v1958_v50 = vor.u32 %v2107_v48, %v1955_v41  ;;  %v1191_v18 = vld [vmem:[#allocation2 + $0x138] sm:$0xff] }
 0x101   :  { %v1032_v49 = vadd.f32 %v891_v39, %v98_v33  ;;  %760 = vmatmul.bf16.gmra.mxu0 %v1842_v35  ;;  %v1255_v22 = vpack.c.bf16 %v1191_v18, %v1191_v18  ;;  %1125 = vst.msk [vmem:[#allocation2 + $0x140] sm:$0xff] %vm21_vm3, %v1060_v12  ;;  %v1963_v35 = vld [vmem:[%s3394_s0 + $0x1d8] sm:$0xf0]  ;;  %v1962_v33 = vor.u32 %v2110_v32, %v1961_v29  ;;  %v2112_v12 = vld [vmem:[%s3394_s0 + $0x1e4] sm:$0xf0] }
 0x102   :  { %v1163_v46 = vld [vmem:[#allocation2 + $0x58] sm:$0xff]  ;;  %2047 = vmatmul.msk.bf16.gmra.mxu3 %vm578_vm2, %v1958_v50  ;;  %v1966_v37 = vor.u32 %v2109_v34, %v1963_v35  ;;  %v103_v32 = vld [vmem:[#allocation2 + $0x88] sm:$0xff] }
 0x103   :  { %v1227_v52 = vpack.c.bf16 %v1163_v46, %v1163_v46  ;;  %v1366_v53 = vsel %vm21_vm3, %v1163_v46, 0.0  ;;  %v1491_v54 = vmul.f32 %v1163_v46, %v1163_v46  ;;  %1097 = vst.msk [vmem:[#allocation2 + $0x60] sm:$0xff] %vm21_vm3, %v1032_v49  ;;  %v101_v50 = vld [vmem:[#allocation2 + $0x78] sm:$0xff] }
 0x104   :  { %v2874_v56 = vpop.f32.mrf.mxu1  ;;  %v1367_v58 = vadd.f32 %v1366_v53, %v1365_v27  ;;  %1320 = vst.msk [vmem:[#allocation3 + $0x9c] sm:$0xf] %vm1280_vm4, %v1255_v22  ;;  %v962_v27 = vpop.f32.mrf.mxu3  ;;  %v128_v53 = vld [vmem:[#allocation2 + $0x150] sm:$0xff] }
 0x105   :  { %1292 = vst.msk [vmem:[#allocation3 + $0x2c] sm:$0xf] %vm1280_vm4, %v1227_v52  ;;  %v1565_v55 = vsel %vm21_vm3, %v1491_v54, 0.0  ;;  %v796_v51 = vpop.f32.mrf.mxu2 }
 0x106   :  { %v1566_v60 = vadd.f32 %v1565_v55, %v1564_v36  ;;  %v723_v63 = vpop.f32.mrf.mxu0  ;;  %v963_v36 = vadd.f32 %v962_v27, %v793_v28 }
 0x107   :  { %v893_v1 = vadd.f32 %v2830_v4, %v723_v63  ;;  %v2082_v4 = vld [vmem:[%s3394_s0 + $0xf4] sm:$0xf0]  ;;  %835 = vmatmul.bf16.gmra.mxu2 %v1962_v33  ;;  %v130_v33 = vld [vmem:[#allocation2 + $0x160] sm:$0xff] }
 0x108   :  { %v1850_v24 = vor.u32 %v2082_v4, %v1849_v11  ;;  %v2920_v45 = vld [vmem:[#allocation2 + $0x140] sm:$0xff] }
 0x109   :  { %v1033_v8 = vadd.f32 %v893_v1, %v99_v61  ;;  %v1256_v48 = vpack.c.bf16 %v2920_v45, %v2920_v45 }
 0x10a   :  { %v1164_v9 = vld [vmem:[#allocation2 + $0x60] sm:$0xff] }
 0x10b   :  { %v1228_v13 = vpack.c.bf16 %v1164_v9, %v1164_v9  ;;  %v1368_v14 = vsel %vm21_vm3, %v1164_v9, 0.0  ;;  %v1492_v15 = vmul.f32 %v1164_v9, %v1164_v9  ;;  %1098 = vst.msk [vmem:[#allocation2 + $0x68] sm:$0xff] %vm21_vm3, %v1033_v8  ;;  %v129_v9 = vld [vmem:[#allocation2 + $0x158] sm:$0xff] }
 0x10c   :  { %v2896_v17 = vpop.f32.mrf.mxu1  ;;  %v1369_v19 = vadd.f32 %v1368_v14, %v1367_v58  ;;  %1321 = vst.msk [vmem:[#allocation3 + $0xa0] sm:$0xf] %vm1280_vm4, %v1256_v48  ;;  %v965_v54 = vpop.f32.mrf.mxu3  ;;  %v1971_v14 = vld [vmem:[%s3394_s0 + $0x1e8] sm:$0xf0] }
 0x10d   :  { %1293 = vst.msk [vmem:[#allocation3 + $0x30] sm:$0xf] %vm1280_vm4, %v1228_v13  ;;  %v1567_v23 = vsel %vm21_vm3, %v1492_v15, 0.0  ;;  %v966_v57 = vadd.f32 %v965_v54, %v796_v51  ;;  %v798_v8 = vpop.f32.mrf.mxu2  ;;  %v2111_v13 = vld [vmem:[%s3394_s0 + $0x1e4] sm:$0xf]  ;;  %v104_v51 = vld [vmem:[#allocation2 + $0x90] sm:$0xff] }
 0x10e   :  { %v1568_v25 = vadd.f32 %v1567_v23, %v1566_v60  ;;  %v726_v26 = vpop.f32.mrf.mxu0  ;;  %v131_v54 = vld [vmem:[#allocation2 + $0x168] sm:$0xff] }
 0x10f   :  { %2035 = vmatmul.msk.bf16.gmra.mxu1 %vm578_vm2, %v1862_v10  ;;  %v896_v31 = vadd.f32 %v2852_v30, %v726_v26  ;;  %v1061_v30 = vadd.f32 %v963_v36, %v127_v20  ;;  %v1062_v55 = vadd.f32 %v966_v57, %v128_v53  ;;  %v1969_v10 = vld [vmem:[%s3394_s0 + $0x1e0] sm:$0xf]  ;;  %v1977_v57 = vld [vmem:[%s3394_s0 + $0x1f0] sm:$0xf] }
 0x110   :  { %v1970_v18 = vor.u32 %v2112_v12, %v1969_v10 }
 0x111   :  { %v1034_v38 = vadd.f32 %v896_v31, %v100_v16  ;;  %765 = vmatmul.bf16.gmra.mxu0 %v1850_v24  ;;  %1126 = vst.msk [vmem:[#allocation2 + $0x148] sm:$0xff] %vm21_vm3, %v1061_v30 }
 0x112   :  { %v1165_v39 = vld [vmem:[#allocation2 + $0x68] sm:$0xff]  ;;  %2048 = vmatmul.msk.bf16.gmra.mxu3 %vm578_vm2, %v1966_v37  ;;  %1127 = vst.msk [vmem:[#allocation2 + $0x150] sm:$0xff] %vm21_vm3, %v1062_v55  ;;  %v2114_v55 = vld [vmem:[%s3394_s0 + $0x1f4] sm:$0xf0] }
 0x113   :  { %v1229_v40 = vpack.c.bf16 %v1165_v39, %v1165_v39  ;;  %v1370_v42 = vsel %vm21_vm3, %v1165_v39, 0.0  ;;  %v1493_v43 = vmul.f32 %v1165_v39, %v1165_v39  ;;  %1099 = vst.msk [vmem:[#allocation2 + $0x70] sm:$0xff] %vm21_vm3, %v1034_v38 }
 0x114   :  { %v2918_v44 = vpop.f32.mrf.mxu1  ;;  %v1371_v47 = vadd.f32 %v1370_v42, %v1369_v19  ;;  %v967_v4 = vpop.f32.mrf.mxu3  ;;  %v1974_v19 = vor.u32 %v2111_v13, %v1971_v14  ;;  %v105_v14 = vld [vmem:[#allocation2 + $0x98] sm:$0xff] }
 0x115   :  { %1294 = vst.msk [vmem:[#allocation3 + $0x34] sm:$0xf] %vm1280_vm4, %v1229_v40  ;;  %v1569_v41 = vsel %vm21_vm3, %v1493_v43, 0.0  ;;  %v968_v15 = vadd.f32 %v967_v4, %v798_v8  ;;  %v801_v35 = vpop.f32.mrf.mxu2 }
 0x116   :  { %v1570_v49 = vadd.f32 %v1569_v41, %v1568_v25  ;;  %v728_v46 = vpop.f32.mrf.mxu0 }
 0x117   :  { %v898_v52 = vadd.f32 %v2874_v56, %v728_v46  ;;  %v1063_v24 = vadd.f32 %v968_v15, %v129_v9  ;;  %840 = vmatmul.bf16.gmra.mxu2 %v1970_v18 }
 0x118   :  { %v2934_v1 = vld [vmem:[#allocation2 + $0x148] sm:$0xff] }
 0x119   :  { %v1035_v58 = vadd.f32 %v898_v52, %v101_v50  ;;  %v1257_v56 = vpack.c.bf16 %v2934_v1, %v2934_v1  ;;  %v2959_v28 = vld [vmem:[#allocation2 + $0x150] sm:$0xff]  ;;  %1128 = vst.msk [vmem:[#allocation2 + $0x158] sm:$0xff] %vm21_vm3, %v1063_v24 }
 0x11a   :  { %v1166_v59 = vld [vmem:[#allocation2 + $0x70] sm:$0xff]  ;;  %v1258_v29 = vpack.c.bf16 %v2959_v28, %v2959_v28 }
 0x11b   :  { %v1230_v60 = vpack.c.bf16 %v1166_v59, %v1166_v59  ;;  %v1372_v61 = vsel %vm21_vm3, %v1166_v59, 0.0  ;;  %v1494_v63 = vmul.f32 %v1166_v59, %v1166_v59  ;;  %1100 = vst.msk [vmem:[#allocation2 + $0x78] sm:$0xff] %vm21_vm3, %v1035_v58 }
 0x11c   :  { %v2932_v0 = vpop.f32.mrf.mxu1  ;;  %v1373_v2 = vadd.f32 %v1372_v61, %v1371_v47  ;;  %1322 = vst.msk [vmem:[#allocation3 + $0xa4] sm:$0xf] %vm1280_vm4, %v1257_v56  ;;  %v970_v37 = vpop.f32.mrf.mxu3  ;;  %v1979_v61 = vld [vmem:[%s3394_s0 + $0x1f8] sm:$0xf0] }
 0x11d   :  { %1295 = vst.msk [vmem:[#allocation3 + $0x38] sm:$0xf] %vm1280_vm4, %v1230_v60  ;;  %v1571_v3 = vsel %vm21_vm3, %v1494_v63, 0.0  ;;  %v971_v38 = vadd.f32 %v970_v37, %v801_v35  ;;  %v803_v53 = vpop.f32.mrf.mxu2  ;;  %v2113_v60 = vld [vmem:[%s3394_s0 + $0x1f4] sm:$0xf]  ;;  %s2225_s0 = smov [#allocation3]  }
 0x11e   :  { %v1572_v5 = vadd.f32 %v1571_v3, %v1570_v49  ;;  %v731_v7 = vpop.f32.mrf.mxu0  ;;  %1323 = vst.msk [vmem:[#allocation3 + $0xa8] sm:$0xf] %vm1280_vm4, %v1258_v29  ;;  %v1982_v56 = vor.u32 %v2113_v60, %v1979_v61  ;;  %v134_v61 = vld [vmem:[#allocation2 + $0x180] sm:$0xff]  ;;  %s3305_s22 = sshll.u32 %s2225_s0, 4  ;;  %s1683_s22 = int_to_ptr.vmem [resolvable:$true] %s3305_s22 }
 0x11f   :  { %v901_v11 = vadd.f32 %v2896_v17, %v731_v7  ;;  %v1064_v40 = vadd.f32 %v971_v38, %v130_v33  ;;  %v106_v33 = vld [vmem:[#allocation2 + $0xa0] sm:$0xff] }
 0x120   :  { %v2973_v41 = vld [vmem:[#allocation2 + $0x158] sm:$0xff] }
 0x121   :  { %v1036_v22 = vadd.f32 %v901_v11, %v102_v6  ;;  %1129 = vst.msk [vmem:[#allocation2 + $0x160] sm:$0xff] %vm21_vm3, %v1064_v40 }
 0x122   :  { %v1167_v23 = vld [vmem:[#allocation2 + $0x78] sm:$0xff]  ;;  %2049 = vmatmul.msk.bf16.gmra.mxu3 %vm578_vm2, %v1974_v19 }
 0x123   :  { %v1231_v17 = vpack.c.bf16 %v1167_v23, %v1167_v23  ;;  %v1374_v25 = vsel %vm21_vm3, %v1167_v23, 0.0  ;;  %v1495_v16 = vmul.f32 %v1167_v23, %v1167_v23  ;;  %1101 = vst.msk [vmem:[#allocation2 + $0x80] sm:$0xff] %vm21_vm3, %v1036_v22  ;;  %v132_v22 = vld [vmem:[#allocation2 + $0x170] sm:$0xff] }
 0x124   :  { %v2957_v26 = vpop.f32.mrf.mxu1  ;;  %v1375_v20 = vadd.f32 %v1374_v25, %v1373_v2  ;;  %v972_v59 = vpop.f32.mrf.mxu3  ;;  %v1978_v2 = vor.u32 %v2114_v55, %v1977_v57 }
 0x125   :  { %1296 = vst.msk [vmem:[#allocation3 + $0x3c] sm:$0xf] %vm1280_vm4, %v1231_v17  ;;  %v1573_v31 = vsel %vm21_vm3, %v1495_v16, 0.0  ;;  %v973_v63 = vadd.f32 %v972_v59, %v803_v53  ;;  %v806_v18 = vpop.f32.mrf.mxu2 }
 0x126   :  { %v1574_v27 = vadd.f32 %v1573_v31, %v1572_v5  ;;  %v733_v34 = vpop.f32.mrf.mxu0 }
 0x127   :  { %v903_v36 = vadd.f32 %v2918_v44, %v733_v34  ;;  %v1259_v44 = vpack.c.bf16 %v2973_v41, %v2973_v41  ;;  %v1065_v6 = vadd.f32 %v973_v63, %v131_v54  ;;  %845 = vmatmul.bf16.gmra.mxu2 %v1978_v2 }
 0x128   :  { %v2996_v10 = vld [vmem:[#allocation2 + $0x160] sm:$0xff] }
 0x129   :  { %v1037_v39 = vadd.f32 %v903_v36, %v103_v32  ;;  %1324 = vst.msk [vmem:[#allocation3 + $0xac] sm:$0xf] %vm1280_vm4, %v1259_v44  ;;  %v1260_v4 = vpack.c.bf16 %v2996_v10, %v2996_v10 }
 0x12a   :  { %v1168_v30 = vld [vmem:[#allocation2 + $0x80] sm:$0xff]  ;;  %1130 = vst.msk [vmem:[#allocation2 + $0x168] sm:$0xff] %vm21_vm3, %v1065_v6 }
 0x12b   :  { %v1232_v42 = vpack.c.bf16 %v1168_v30, %v1168_v30  ;;  %v1376_v43 = vsel %vm21_vm3, %v1168_v30, 0.0  ;;  %v1496_v47 = vmul.f32 %v1168_v30, %v1168_v30  ;;  %1102 = vst.msk [vmem:[#allocation2 + $0x88] sm:$0xff] %vm21_vm3, %v1037_v39  ;;  %v133_v30 = vld [vmem:[#allocation2 + $0x178] sm:$0xff] }
 0x12c   :  { %v2971_v48 = vpop.f32.mrf.mxu1  ;;  %v1377_v49 = vadd.f32 %v1376_v43, %v1375_v20  ;;  %1325 = vst.msk [vmem:[#allocation3 + $0xb0] sm:$0xf] %vm1280_vm4, %v1260_v4  ;;  %v975_v23 = vpop.f32.mrf.mxu3 }
 0x12d   :  { %1297 = vst.msk [vmem:[#allocation3 + $0x40] sm:$0xf] %vm1280_vm4, %v1232_v42  ;;  %v1575_v50 = vsel %vm21_vm3, %v1496_v47, 0.0  ;;  %v976_v24 = vadd.f32 %v975_v23, %v806_v18  ;;  %v808_v38 = vpop.f32.mrf.mxu2 }
 0x12e   :  { %v1576_v46 = vadd.f32 %v1575_v50, %v1574_v27  ;;  %v736_v52 = vpop.f32.mrf.mxu0 }
 0x12f   :  { %v906_v58 = vadd.f32 %v2932_v0, %v736_v52  ;;  %v1066_v16 = vadd.f32 %v976_v24, %v132_v22  ;;  %v135_v22 = vld [vmem:[#allocation2 + $0x188] sm:$0xff] }
 0x131   :  { %v1038_v3 = vadd.f32 %v906_v58, %v104_v51  ;;  %v3008_v32 = vld [vmem:[#allocation2 + $0x168] sm:$0xff]  ;;  %1131 = vst.msk [vmem:[#allocation2 + $0x170] sm:$0xff] %vm21_vm3, %v1066_v16 }
 0x132   :  { %v1169_v5 = vld [vmem:[#allocation2 + $0x88] sm:$0xff]  ;;  %2050 = vmatmul.msk.bf16.gmra.mxu3 %vm578_vm2, %v1982_v56  ;;  %v1261_v35 = vpack.c.bf16 %v3008_v32, %v3008_v32 }
 0x133   :  { %v1233_v0 = vpack.c.bf16 %v1169_v5, %v1169_v5  ;;  %v1378_v7 = vsel %vm21_vm3, %v1169_v5, 0.0  ;;  %v1497_v8 = vmul.f32 %v1169_v5, %v1169_v5  ;;  %1103 = vst.msk [vmem:[#allocation2 + $0x90] sm:$0xff] %vm21_vm3, %v1038_v3  ;;  %v107_v58 = vld [vmem:[#allocation2 + $0xa8] sm:$0xff] }
 0x134   :  { %v912_v9 = vpop.f32.mrf.mxu1  ;;  %v1379_v11 = vadd.f32 %v1378_v7, %v1377_v49  ;;  %1326 = vst.msk [vmem:[#allocation3 + $0xb4] sm:$0xf] %vm1280_vm4, %v1261_v35  ;;  %v977_v40 = vpop.f32.mrf.mxu3 }
 0x135   :  { %1298 = vst.msk [vmem:[#allocation3 + $0x44] sm:$0xf] %vm1280_vm4, %v1233_v0  ;;  %v1577_v12 = vsel %vm21_vm3, %v1497_v8, 0.0  ;;  %v978_v42 = vadd.f32 %v977_v40, %v808_v38  ;;  %v811_v55 = vpop.f32.mrf.mxu2 }
 0x136   :  { %v1578_v13 = vadd.f32 %v1577_v12, %v1576_v46  ;;  %v738_v15 = vpop.f32.mrf.mxu0 }
 0x137   :  { %v908_v19 = vadd.f32 %v2957_v26, %v738_v15  ;;  %v1067_v49 = vadd.f32 %v978_v42, %v133_v30 }
 0x138   :  { %v3019_v52 = vld [vmem:[#allocation2 + $0x170] sm:$0xff] }
 0x139   :  { %v1039_v17 = vadd.f32 %v908_v19, %v105_v14  ;;  %v1262_v54 = vpack.c.bf16 %v3019_v52, %v3019_v52  ;;  %1132 = vst.msk [vmem:[#allocation2 + $0x178] sm:$0xff] %vm21_vm3, %v1067_v49  ;;  %v108_v14 = vld [vmem:[#allocation2 + $0xb0] sm:$0xff] }
 0x13a   :  { %v1170_v25 = vld [vmem:[#allocation2 + $0x90] sm:$0xff] }
 0x13b   :  { %v1234_v20 = vpack.c.bf16 %v1170_v25, %v1170_v25  ;;  %v1380_v29 = vsel %vm21_vm3, %v1170_v25, 0.0  ;;  %v1498_v31 = vmul.f32 %v1170_v25, %v1170_v25  ;;  %1104 = vst.msk [vmem:[#allocation2 + $0x98] sm:$0xff] %vm21_vm3, %v1039_v17 }
 0x13c   :  { %v915_v27 = vpop.f32.mrf.mxu1  ;;  %v1381_v34 = vadd.f32 %v1380_v29, %v1379_v11  ;;  %1327 = vst.msk [vmem:[#allocation3 + $0xb8] sm:$0xf] %vm1280_vm4, %v1262_v54  ;;  %v980_v63 = vpop.f32.mrf.mxu3 }
 0x13d   :  { %1299 = vst.msk [vmem:[#allocation3 + $0x48] sm:$0xf] %vm1280_vm4, %v1234_v20  ;;  %v1579_v26 = vsel %vm21_vm3, %v1498_v31, 0.0  ;;  %v981_v2 = vadd.f32 %v980_v63, %v811_v55  ;;  %v813_v18 = vpop.f32.mrf.mxu2 }
 0x13e   :  { %v1580_v36 = vadd.f32 %v1579_v26, %v1578_v13  ;;  %v741_v37 = vpop.f32.mrf.mxu0 }
 0x13f   :  { %v911_v39 = vadd.f32 %v2971_v48, %v741_v37  ;;  %v1068_v5 = vadd.f32 %v981_v2, %v134_v61  ;;  %v111_v2 = vld [vmem:[#allocation2 + $0xc8] sm:$0xff] }
 0x140   :  { %v3029_v11 = vld [vmem:[#allocation2 + $0x178] sm:$0xff] }
 0x141   :  { %v1040_v43 = vadd.f32 %v911_v39, %v106_v33  ;;  %1133 = vst.msk [vmem:[#allocation2 + $0x180] sm:$0xff] %vm21_vm3, %v1068_v5  ;;  %v136_v33 = vld [vmem:[#allocation2 + $0x190] sm:$0xff] }
 0x142   :  { %v1171_v47 = vld [vmem:[#allocation2 + $0x98] sm:$0xff] }
 0x143   :  { %v1235_v44 = vpack.c.bf16 %v1171_v47, %v1171_v47  ;;  %v1382_v50 = vsel %vm21_vm3, %v1171_v47, 0.0  ;;  %v1499_v46 = vmul.f32 %v1171_v47, %v1171_v47  ;;  %1105 = vst.msk [vmem:[#allocation2 + $0xa0] sm:$0xff] %vm21_vm3, %v1040_v43 }
 0x144   :  { %v917_v51 = vpop.f32.mrf.mxu1  ;;  %v1383_v53 = vadd.f32 %v1382_v50, %v1381_v34  ;;  %v982_v23 = vpop.f32.mrf.mxu3 }
 0x145   :  { %1300 = vst.msk [vmem:[#allocation3 + $0x4c] sm:$0xf] %vm1280_vm4, %v1235_v44  ;;  %v1581_v48 = vsel %vm21_vm3, %v1499_v46, 0.0  ;;  %v983_v24 = vadd.f32 %v982_v23, %v813_v18  ;;  %v110_v44 = vld [vmem:[#allocation2 + $0xc0] sm:$0xff] }
 0x146   :  { %v1582_v57 = vadd.f32 %v1581_v48, %v1580_v36  ;;  %v743_v59 = vpop.f32.mrf.mxu0  ;;  %v816_v26 = vpop.f32.mrf.mxu2 }
 0x147   :  { %v913_v60 = vadd.f32 %v912_v9, %v743_v59  ;;  %v1263_v9 = vpack.c.bf16 %v3029_v11, %v3029_v11  ;;  %v1069_v16 = vadd.f32 %v983_v24, %v135_v22  ;;  %v112_v22 = vld [vmem:[#allocation2 + $0xd0] sm:$0xff] }
 0x148   :  { %v3046_v31 = vld [vmem:[#allocation2 + $0x180] sm:$0xff] }
 0x149   :  { %v1041_v56 = vadd.f32 %v913_v60, %v107_v58  ;;  %1328 = vst.msk [vmem:[#allocation3 + $0xbc] sm:$0xf] %vm1280_vm4, %v1263_v9  ;;  %v1264_v34 = vpack.c.bf16 %v3046_v31, %v3046_v31 }
 0x14a   :  { %v1172_v3 = vld [vmem:[#allocation2 + $0xa0] sm:$0xff]  ;;  %1134 = vst.msk [vmem:[#allocation2 + $0x188] sm:$0xff] %vm21_vm3, %v1069_v16  ;;  %v139_v16 = vld [vmem:[#allocation2 + $0x1a8] sm:$0xff] }
 0x14b   :  { %v1236_v6 = vpack.c.bf16 %v1172_v3, %v1172_v3  ;;  %v1384_v0 = vsel %vm21_vm3, %v1172_v3, 0.0  ;;  %v1500_v7 = vmul.f32 %v1172_v3, %v1172_v3  ;;  %1106 = vst.msk [vmem:[#allocation2 + $0xa8] sm:$0xff] %vm21_vm3, %v1041_v56 }
 0x14c   :  { %v920_v8 = vpop.f32.mrf.mxu1  ;;  %v3031_v4 = vadd.f32 %v1384_v0, %v1383_v53  ;;  %1329 = vst.msk [vmem:[#allocation3 + $0xc0] sm:$0xf] %vm1280_vm4, %v1264_v34  ;;  %v985_v37 = vpop.f32.mrf.mxu3  ;;  %v137_v53 = vld [vmem:[#allocation2 + $0x198] sm:$0xff] }
 0x14d   :  { %1301 = vst.msk [vmem:[#allocation3 + $0x50] sm:$0xf] %vm1280_vm4, %v1236_v6  ;;  %v1583_v12 = vsel %vm21_vm3, %v1500_v7, 0.0  ;;  %v986_v38 = vadd.f32 %v985_v37, %v816_v26  ;;  %v138_v6 = vld [vmem:[#allocation2 + $0x1a0] sm:$0xff] }
 0x14e   :  { %v3038_v13 = vadd.f32 %v1583_v12, %v1582_v57  ;;  %v746_v15 = vpop.f32.mrf.mxu0  ;;  %v818_v46 = vpop.f32.mrf.mxu2 }
 0x14f   :  { %v916_v19 = vadd.f32 %v915_v27, %v746_v15  ;;  %v109_v27 = vld [vmem:[#allocation2 + $0xb8] sm:$0xff]  ;;  %v1070_v40 = vadd.f32 %v986_v38, %v136_v33 }
 0x150   :  { %v113_v33 = vld [vmem:[#allocation2 + $0xd8] sm:$0xff] }
 0x151   :  { %v1042_v17 = vadd.f32 %v916_v19, %v108_v14  ;;  %v3058_v47 = vld [vmem:[#allocation2 + $0x188] sm:$0xff]  ;;  %1135 = vst.msk [vmem:[#allocation2 + $0x190] sm:$0xff] %vm21_vm3, %v1070_v40  ;;  %v140_v40 = vld [vmem:[#allocation2 + $0x1b0] sm:$0xff] }
 0x152   :  { %v3041_v25 = vld [vmem:[#allocation2 + $0xa8] sm:$0xff]  ;;  %v1265_v49 = vpack.c.bf16 %v3058_v47, %v3058_v47 }
 0x153   :  { %v1237_v20 = vpack.c.bf16 %v3041_v25, %v3041_v25  ;;  %1107 = vst.msk [vmem:[#allocation2 + $0xb0] sm:$0xff] %vm21_vm3, %v1042_v17 }
 0x154   :  { %v922_v29 = vpop.f32.mrf.mxu1  ;;  %1330 = vst.msk [vmem:[#allocation3 + $0xc4] sm:$0xf] %vm1280_vm4, %v1265_v49  ;;  %v987_v54 = vpop.f32.mrf.mxu3 }
 0x155   :  { %1302 = vst.msk [vmem:[#allocation3 + $0x54] sm:$0xf] %vm1280_vm4, %v1237_v20  ;;  %v988_v48 = vadd.f32 %v987_v54, %v818_v46 }
 0x156   :  { %v748_v35 = vpop.f32.mrf.mxu0  ;;  %v821_v3 = vpop.f32.mrf.mxu2 }
 0x157   :  { %v918_v36 = vadd.f32 %v917_v51, %v748_v35  ;;  %v1071_v59 = vadd.f32 %v988_v48, %v137_v53 }
 0x158   :  { %v3070_v61 = vld [vmem:[#allocation2 + $0x190] sm:$0xff] }
 0x159   :  { %v1043_v39 = vadd.f32 %v918_v36, %v109_v27  ;;  %v1266_v63 = vpack.c.bf16 %v3070_v61, %v3070_v61  ;;  %1136 = vst.msk [vmem:[#allocation2 + $0x198] sm:$0xff] %vm21_vm3, %v1071_v59  ;;  %v114_v59 = vld [vmem:[#allocation2 + $0xe0] sm:$0xff] }
 0x15a   :  { %v3053_v30 = vld [vmem:[#allocation2 + $0xb0] sm:$0xff] }
 0x15b   :  { %v1238_v42 = vpack.c.bf16 %v3053_v30, %v3053_v30  ;;  %1108 = vst.msk [vmem:[#allocation2 + $0xb8] sm:$0xff] %vm21_vm3, %v1043_v39 }
 0x15c   :  { %v925_v43 = vpop.f32.mrf.mxu1  ;;  %1331 = vst.msk [vmem:[#allocation3 + $0xc8] sm:$0xf] %vm1280_vm4, %v1266_v63  ;;  %v990_v0 = vpop.f32.mrf.mxu3 }
 0x15d   :  { %1303 = vst.msk [vmem:[#allocation3 + $0x58] sm:$0xf] %vm1280_vm4, %v1238_v42  ;;  %v991_v7 = vadd.f32 %v990_v0, %v821_v3 }
 0x15e   :  { %v751_v50 = vpop.f32.mrf.mxu0  ;;  %v823_v24 = vpop.f32.mrf.mxu2 }
 0x15f   :  { %v921_v51 = vadd.f32 %v920_v8, %v751_v50  ;;  %v1072_v12 = vadd.f32 %v991_v7, %v138_v6 }
 0x160   :  { %v3082_v18 = vld [vmem:[#allocation2 + $0x198] sm:$0xff] }
 0x161   :  { %v1044_v57 = vadd.f32 %v921_v51, %v110_v44  ;;  %1137 = vst.msk [vmem:[#allocation2 + $0x1a0] sm:$0xff] %vm21_vm3, %v1072_v12  ;;  %v1267_v19 = vpack.c.bf16 %v3082_v18, %v3082_v18  ;;  %v115_v12 = vld [vmem:[#allocation2 + $0xe8] sm:$0xff] }
 0x162   :  { %v3065_v58 = vld [vmem:[#allocation2 + $0xb8] sm:$0xff] }
 0x163   :  { %v1239_v55 = vpack.c.bf16 %v3065_v58, %v3065_v58  ;;  %1109 = vst.msk [vmem:[#allocation2 + $0xc0] sm:$0xff] %vm21_vm3, %v1044_v57 }
 0x164   :  { %v927_v60 = vpop.f32.mrf.mxu1  ;;  %1332 = vst.msk [vmem:[#allocation3 + $0xcc] sm:$0xf] %vm1280_vm4, %v1267_v19  ;;  %v992_v20 = vpop.f32.mrf.mxu3 }
 0x165   :  { %1304 = vst.msk [vmem:[#allocation3 + $0x5c] sm:$0xf] %vm1280_vm4, %v1239_v55 }
 0x166   :  { %v753_v56 = vpop.f32.mrf.mxu0 }
 0x167   :  { %v923_v5 = vadd.f32 %v922_v29, %v753_v56  ;;  %v993_v29 = vadd.f32 %v992_v20, %v823_v24  ;;  %v1501_v24 = vmul.f32 %v3041_v25, %v3041_v25 }
 0x168   :  { %v3098_v46 = vld [vmem:[#allocation2 + $0x1a0] sm:$0xff] }
 0x169   :  { %v1045_v8 = vadd.f32 %v923_v5, %v111_v2  ;;  %v1073_v35 = vadd.f32 %v993_v29, %v139_v16  ;;  %v1268_v48 = vpack.c.bf16 %v3098_v46, %v3098_v46  ;;  %v141_v2 = vld [vmem:[#allocation2 + $0x1b8] sm:$0xff]  ;;  %v118_v29 = vld [vmem:[#allocation2 + $0x100] sm:$0xff] }
 0x16a   :  { %v3077_v9 = vld [vmem:[#allocation2 + $0xc0] sm:$0xff]  ;;  %v826_v38 = vpop.f32.mrf.mxu2 }
 0x16b   :  { %v1240_v14 = vpack.c.bf16 %v3077_v9, %v3077_v9  ;;  %1110 = vst.msk [vmem:[#allocation2 + $0xc8] sm:$0xff] %vm21_vm3, %v1045_v8 }
 0x16c   :  { %v930_v15 = vpop.f32.mrf.mxu1  ;;  %1138 = vst.msk [vmem:[#allocation2 + $0x1a8] sm:$0xff] %vm21_vm3, %v1073_v35 }
 0x16d   :  { %1305 = vst.msk [vmem:[#allocation3 + $0x60] sm:$0xf] %vm1280_vm4, %v1240_v14 }
 0x16e   :  { %v756_v23 = vpop.f32.mrf.mxu0  ;;  %1333 = vst.msk [vmem:[#allocation3 + $0xd0] sm:$0xf] %vm1280_vm4, %v1268_v48 }
 0x16f   :  { %v926_v17 = vadd.f32 %v925_v43, %v756_v23 }
 0x171   :  { %v1046_v34 = vadd.f32 %v926_v17, %v112_v22 }
 0x172   :  { %v3089_v27 = vld [vmem:[#allocation2 + $0xc8] sm:$0xff] }
 0x173   :  { %v1241_v26 = vpack.c.bf16 %v3089_v27, %v3089_v27  ;;  %1111 = vst.msk [vmem:[#allocation2 + $0xd0] sm:$0xff] %vm21_vm3, %v1046_v34  ;;  %v3103_v54 = vld [vmem:[#allocation2 + $0x1a8] sm:$0xff] }
 0x174   :  { %v932_v36 = vpop.f32.mrf.mxu1  ;;  %v1269_v57 = vpack.c.bf16 %v3103_v54, %v3103_v54 }
 0x175   :  { %1306 = vst.msk [vmem:[#allocation3 + $0x64] sm:$0xf] %vm1280_vm4, %v1241_v26  ;;  %v995_v42 = vpop.f32.mrf.mxu3 }
 0x176   :  { %v758_v37 = vpop.f32.mrf.mxu0  ;;  %v996_v43 = vadd.f32 %v995_v42, %v826_v38  ;;  %1334 = vst.msk [vmem:[#allocation3 + $0xd4] sm:$0xf] %vm1280_vm4, %v1269_v57  ;;  %v1386_v38 = vsel %vm21_vm3, %v3041_v25, 0.0  ;;  %v116_v42 = vld [vmem:[#allocation2 + $0xf0] sm:$0xff] }
 0x177   :  { %v928_v39 = vadd.f32 %v927_v60, %v758_v37  ;;  %v828_v60 = vpop.f32.mrf.mxu2  ;;  %v1387_v25 = vadd.f32 %v1386_v38, %v3031_v4 }
 0x178   :  { %v1074_v50 = vadd.f32 %v996_v43, %v140_v40 }
 0x179   :  { %v1047_v49 = vadd.f32 %v928_v39, %v113_v33  ;;  %v1585_v39 = vsel %vm21_vm3, %v1501_v24, 0.0 }
 0x17a   :  { %v3096_v44 = vld [vmem:[#allocation2 + $0xd0] sm:$0xff]  ;;  %1139 = vst.msk [vmem:[#allocation2 + $0x1b0] sm:$0xff] %vm21_vm3, %v1074_v50  ;;  %v1388_v50 = vsel %vm21_vm3, %v3053_v30, 0.0 }
 0x17b   :  { %v1242_v51 = vpack.c.bf16 %v3096_v44, %v3096_v44  ;;  %1112 = vst.msk [vmem:[#allocation2 + $0xd8] sm:$0xff] %vm21_vm3, %v1047_v49  ;;  %v1396_v38 = vsel %vm21_vm3, %v3096_v44, 0.0 }
 0x17c   :  { %v935_v53 = vpop.f32.mrf.mxu1 }
 0x17d   :  { %1307 = vst.msk [vmem:[#allocation3 + $0x68] sm:$0xf] %vm1280_vm4, %v1242_v51  ;;  %v997_v56 = vpop.f32.mrf.mxu3 }
 0x17e   :  { %v761_v55 = vpop.f32.mrf.mxu0  ;;  %v998_v3 = vadd.f32 %v997_v56, %v828_v60  ;;  %v143_v60 = vld [vmem:[#allocation2 + $0x1c8] sm:$0xff] }
 0x17f   :  { %v931_v63 = vadd.f32 %v930_v15, %v761_v55  ;;  %v831_v15 = vpop.f32.mrf.mxu2  ;;  %v142_v55 = vld [vmem:[#allocation2 + $0x1c0] sm:$0xff] }
 0x180   :  { %v1075_v0 = vadd.f32 %v998_v3, %v141_v2  ;;  %v1504_v2 = vmul.f32 %v3077_v9, %v3077_v9  ;;  %v1586_v3 = vadd.f32 %v1585_v39, %v3038_v13 }
 0x181   :  { %v1048_v5 = vadd.f32 %v931_v63, %v114_v59  ;;  %v3126_v16 = vld [vmem:[#allocation2 + $0x1b0] sm:$0xff] }
 0x182   :  { %v3113_v6 = vld [vmem:[#allocation2 + $0xd8] sm:$0xff]  ;;  %1140 = vst.msk [vmem:[#allocation2 + $0x1b8] sm:$0xff] %vm21_vm3, %v1075_v0  ;;  %v1270_v26 = vpack.c.bf16 %v3126_v16, %v3126_v16  ;;  %v1591_v24 = vsel %vm21_vm3, %v1504_v2, 0.0 }
 0x183   :  { %v1243_v7 = vpack.c.bf16 %v3113_v6, %v3113_v6  ;;  %1113 = vst.msk [vmem:[#allocation2 + $0xe0] sm:$0xff] %vm21_vm3, %v1048_v5  ;;  %v1389_v5 = vadd.f32 %v1388_v50, %v1387_v25 }
 0x184   :  { %v3118_v8 = vpop.f32.mrf.mxu1  ;;  %1335 = vst.msk [vmem:[#allocation3 + $0xd8] sm:$0xf] %vm1280_vm4, %v1270_v26 }
 0x185   :  { %1308 = vst.msk [vmem:[#allocation3 + $0x6c] sm:$0xf] %vm1280_vm4, %v1243_v7  ;;  %v1000_v22 = vpop.f32.mrf.mxu3 }
 0x186   :  { %v763_v14 = vpop.f32.mrf.mxu0  ;;  %v1001_v48 = vadd.f32 %v1000_v22, %v831_v15 }
 0x187   :  { %v933_v19 = vadd.f32 %v932_v36, %v763_v14  ;;  %v1502_v36 = vmul.f32 %v3053_v30, %v3053_v30  ;;  %v833_v49 = vpop.f32.mrf.mxu2  ;;  %v1390_v30 = vsel %vm21_vm3, %v3065_v58, 0.0  ;;  %v1505_v14 = vmul.f32 %v3089_v27, %v3089_v27 }
 0x188   :  { %v1076_v56 = vadd.f32 %v1001_v48, %v142_v55 }
 0x189   :  { %v1049_v23 = vadd.f32 %v933_v19, %v115_v12  ;;  %v3131_v35 = vld [vmem:[#allocation2 + $0x1b8] sm:$0xff]  ;;  %v1587_v59 = vsel %vm21_vm3, %v1502_v36, 0.0  ;;  %v1392_v12 = vsel %vm21_vm3, %v3077_v9, 0.0  ;;  %v1506_v9 = vmul.f32 %v3096_v44, %v3096_v44 }
 0x18a   :  { %v3124_v17 = vld [vmem:[#allocation2 + $0xe0] sm:$0xff]  ;;  %v1271_v37 = vpack.c.bf16 %v3131_v35, %v3131_v35  ;;  %v1588_v22 = vadd.f32 %v1587_v59, %v1586_v3  ;;  %1141 = vst.msk [vmem:[#allocation2 + $0x1c0] sm:$0xff] %vm21_vm3, %v1076_v56  ;;  %v117_v36 = vld [vmem:[#allocation2 + $0xf8] sm:$0xff] }
 0x18b   :  { %v1244_v20 = vpack.c.bf16 %v3124_v17, %v3124_v17  ;;  %1114 = vst.msk [vmem:[#allocation2 + $0xe8] sm:$0xff] %vm21_vm3, %v1049_v23  ;;  %v1391_v23 = vadd.f32 %v1390_v30, %v1389_v5  ;;  %v1595_v48 = vsel %vm21_vm3, %v1506_v9, 0.0  ;;  %v1508_v44 = vmul.f32 %v3124_v17, %v3124_v17 }
 0x18c   :  { %v940_v34 = vpop.f32.mrf.mxu1  ;;  %1336 = vst.msk [vmem:[#allocation3 + $0xdc] sm:$0xf] %vm1280_vm4, %v1271_v37  ;;  %v1593_v37 = vsel %vm21_vm3, %v1505_v14, 0.0  ;;  %v1400_v30 = vsel %vm21_vm3, %v3124_v17, 0.0 }
 0x18d   :  { %v941_v33 = vadd.f32 %v940_v34, %v2710_v62  ;;  %1309 = vst.msk [vmem:[#allocation3 + $0x70] sm:$0xf] %vm1280_vm4, %v1244_v20  ;;  %v1503_v62 = vmul.f32 %v3065_v58, %v3065_v58  ;;  %v1002_v57 = vpop.f32.mrf.mxu3  ;;  %v119_v58 = vld [vmem:[#allocation2 + $0x108] sm:$0xff]  ;;  %v1394_v20 = vsel %vm21_vm3, %v3089_v27, 0.0  ;;  %v1393_v34 = vadd.f32 %v1392_v12, %v1391_v23 }
 0x18e   :  { %v766_v43 = vpop.f32.mrf.mxu0  ;;  %v1003_v63 = vadd.f32 %v1002_v57, %v833_v49  ;;  %v1507_v27 = vmul.f32 %v3113_v6, %v3113_v6  ;;  %v1398_v57 = vsel %vm21_vm3, %v3113_v6, 0.0 }
 0x18f   :  { %v1052_v40 = vadd.f32 %v941_v33, %v118_v29  ;;  %v936_v51 = vadd.f32 %v935_v53, %v766_v43  ;;  %v1589_v7 = vsel %vm21_vm3, %v1503_v62, 0.0  ;;  %v1395_v50 = vadd.f32 %v1394_v20, %v1393_v34 }
 0x190   :  { %v1077_v4 = vadd.f32 %v1003_v63, %v143_v60  ;;  %v1590_v29 = vadd.f32 %v1589_v7, %v1588_v22  ;;  %v1597_v63 = vsel %vm21_vm3, %v1507_v27, 0.0 }
 0x191   :  { %1117 = vst.msk [vmem:[#allocation2 + $0x100] sm:$0xff] %vm21_vm3, %v1052_v40  ;;  %v1050_v53 = vadd.f32 %v936_v51, %v116_v42  ;;  %v144_v42 = vld [vmem:[#allocation2 + $0x1d0] sm:$0xff]  ;;  %v1397_v55 = vadd.f32 %v1396_v38, %v1395_v50  ;;  %v3190_v6 = vld [vmem:[#allocation2 + $0x1c0] sm:$0xff] }
 0x192   :  { %v1181_v0 = vld [vmem:[#allocation2 + $0xe8] sm:$0xff]  ;;  %1142 = vst.msk [vmem:[#allocation2 + $0x1c8] sm:$0xff] %vm21_vm3, %v1077_v4  ;;  %v1592_v49 = vadd.f32 %v1591_v24, %v1590_v29  ;;  %v1272_v5 = vpack.c.bf16 %v3190_v6, %v3190_v6  ;;  %v1599_v4 = vsel %vm21_vm3, %v1508_v44, 0.0  ;;  %v145_v24 = vld [vmem:[#allocation2 + $0x1d8] sm:$0xff] }
 0x193   :  { %v1245_v15 = vpack.c.bf16 %v1181_v0, %v1181_v0  ;;  %1115 = vst.msk [vmem:[#allocation2 + $0xf0] sm:$0xff] %vm21_vm3, %v1050_v53  ;;  %v1509_v2 = vmul.f32 %v1181_v0, %v1181_v0  ;;  %v1399_v3 = vadd.f32 %v1398_v57, %v1397_v55  ;;  %v1402_v7 = vsel %vm21_vm3, %v1181_v0, 0.0 }
 0x194   :  { %v942_v19 = vpop.f32.mrf.mxu1  ;;  %v1594_v59 = vadd.f32 %v1593_v37, %v1592_v49  ;;  %1337 = vst.msk [vmem:[#allocation3 + $0xe0] sm:$0xf] %vm1280_vm4, %v1272_v5 }
 0x195   :  { %v943_v13 = vadd.f32 %v942_v19, %v2729_v21  ;;  %1310 = vst.msk [vmem:[#allocation3 + $0x74] sm:$0xf] %vm1280_vm4, %v1245_v15  ;;  %v836_v21 = vpop.f32.mrf.mxu2  ;;  %v1005_v43 = vpop.f32.mrf.mxu3  ;;  %v1401_v15 = vadd.f32 %v1400_v30, %v1399_v3  ;;  %v1601_v22 = vsel %vm21_vm3, %v1509_v2, 0.0  ;;  %v2142_v3 = vld [vmem:[#allocation2 + $0x118] sm:$0xff] }
 0x196   :  { %v768_v33 = vpop.f32.mrf.mxu0  ;;  %v1006_v51 = vadd.f32 %v1005_v43, %v836_v21  ;;  %v1596_v56 = vadd.f32 %v1595_v48, %v1594_v59  ;;  %v1515_v5 = vmul.f32 %v2142_v3, %v2142_v3 }
 0x197   :  { %v1053_v26 = vadd.f32 %v943_v13, %v119_v58  ;;  %v938_v40 = vadd.f32 %v3118_v8, %v768_v33  ;;  %v1403_v9 = vadd.f32 %v1402_v7, %v1401_v15 }
 0x198   :  { %v1184_v39 = vld [vmem:[#allocation2 + $0x100] sm:$0xff]  ;;  %v1078_v60 = vadd.f32 %v1006_v51, %v144_v42  ;;  %v1598_v14 = vadd.f32 %v1597_v63, %v1596_v56 }
 0x199   :  { %v1248_v62 = vpack.c.bf16 %v1184_v39, %v1184_v39  ;;  %1118 = vst.msk [vmem:[#allocation2 + $0x108] sm:$0xff] %vm21_vm3, %v1053_v26  ;;  %v1051_v25 = vadd.f32 %v938_v40, %v117_v36  ;;  %v3198_v12 = vld [vmem:[#allocation2 + $0x1c8] sm:$0xff]  ;;  %v1512_v38 = vmul.f32 %v1184_v39, %v1184_v39  ;;  %v1408_v50 = vsel %vm21_vm3, %v1184_v39, 0.0 }
 0x19a   :  { %v1182_v8 = vld [vmem:[#allocation2 + $0xf0] sm:$0xff]  ;;  %1143 = vst.msk [vmem:[#allocation2 + $0x1d0] sm:$0xff] %vm21_vm3, %v1078_v60  ;;  %v1273_v19 = vpack.c.bf16 %v3198_v12, %v3198_v12  ;;  %v1600_v20 = vadd.f32 %v1599_v4, %v1598_v14  ;;  %v146_v60 = vld [vmem:[#allocation2 + $0x1e0] sm:$0xff] }
 0x19b   :  { %1313 = vst.msk [vmem:[#allocation3 + $0x80] sm:$0xf] %vm1280_vm4, %v1248_v62  ;;  %v1246_v53 = vpack.c.bf16 %v1182_v8, %v1182_v8  ;;  %v1510_v17 = vmul.f32 %v1182_v8, %v1182_v8  ;;  %v1404_v23 = vsel %vm21_vm3, %v1182_v8, 0.0  ;;  %v1607_v55 = vsel %vm21_vm3, %v1512_v38, 0.0 }
 0x19c   :  { %1116 = vst.msk [vmem:[#allocation2 + $0xf8] sm:$0xff] %vm21_vm3, %v1051_v25  ;;  %v1602_v36 = vadd.f32 %v1601_v22, %v1600_v20  ;;  %v1405_v33 = vadd.f32 %v1404_v23, %v1403_v9  ;;  %v2141_v25 = vld [vmem:[#allocation2 + $0x110] sm:$0xff]  ;;  %v1613_v9 = vsel %vm21_vm3, %v1515_v5, 0.0  ;;  %v1424_v5 = vsel %vm21_vm3, %v2920_v45, 0.0 }
 0x19d   :  { %1311 = vst.msk [vmem:[#allocation3 + $0x78] sm:$0xf] %vm1280_vm4, %v1246_v53  ;;  %v838_v58 = vpop.f32.mrf.mxu2  ;;  %v1007_v0 = vpop.f32.mrf.mxu3  ;;  %v1603_v26 = vsel %vm21_vm3, %v1510_v17, 0.0  ;;  %v1514_v59 = vmul.f32 %v2141_v25, %v2141_v25  ;;  %v1412_v56 = vsel %vm21_vm3, %v2141_v25, 0.0 }
 0x19e   :  { %v1008_v34 = vadd.f32 %v1007_v0, %v838_v58  ;;  %1338 = vst.msk [vmem:[#allocation3 + $0xe4] sm:$0xf] %vm1280_vm4, %v1273_v19  ;;  %v1604_v43 = vadd.f32 %v1603_v26, %v1602_v36  ;;  %v1414_v58 = vsel %vm21_vm3, %v2142_v3, 0.0  ;;  %v2143_v19 = vld [vmem:[#allocation2 + $0x120] sm:$0xff] }
 0x19f   :  { %v1611_v15 = vsel %vm21_vm3, %v1514_v59, 0.0  ;;  %v1516_v22 = vmul.f32 %v2143_v19, %v2143_v19 }
 0x1a0   :  { %v1185_v13 = vld [vmem:[#allocation2 + $0x108] sm:$0xff]  ;;  %v1079_v37 = vadd.f32 %v1008_v34, %v145_v24 }
 0x1a1   :  { %v1249_v29 = vpack.c.bf16 %v1185_v13, %v1185_v13  ;;  %v1513_v62 = vmul.f32 %v1185_v13, %v1185_v13  ;;  %v1410_v8 = vsel %vm21_vm3, %v1185_v13, 0.0  ;;  %v3215_v39 = vld [vmem:[#allocation2 + $0x1d0] sm:$0xff]  ;;  %v2144_v34 = vld [vmem:[#allocation2 + $0x128] sm:$0xff] }
 0x1a2   :  { %1144 = vst.msk [vmem:[#allocation2 + $0x1d8] sm:$0xff] %vm21_vm3, %v1079_v37  ;;  %v1274_v13 = vpack.c.bf16 %v3215_v39, %v3215_v39  ;;  %v1517_v26 = vmul.f32 %v2144_v34, %v2144_v34  ;;  %v1615_v37 = vsel %vm21_vm3, %v1516_v22, 0.0  ;;  %v1418_v38 = vsel %vm21_vm3, %v2144_v34, 0.0 }
 0x1a3   :  { %1314 = vst.msk [vmem:[#allocation3 + $0x84] sm:$0xf] %vm1280_vm4, %v1249_v29  ;;  %v1183_v21 = vld [vmem:[#allocation2 + $0xf8] sm:$0xff]  ;;  %v1609_v4 = vsel %vm21_vm3, %v1513_v62, 0.0  ;;  %v1416_v29 = vsel %vm21_vm3, %v2143_v19, 0.0  ;;  %v148_v19 = vld [vmem:[#allocation2 + $0x1f0] sm:$0xff] }
 0x1a4   :  { %v1247_v27 = vpack.c.bf16 %v1183_v21, %v1183_v21  ;;  %v1406_v40 = vsel %vm21_vm3, %v1183_v21, 0.0  ;;  %v1511_v42 = vmul.f32 %v1183_v21, %v1183_v21  ;;  %1339 = vst.msk [vmem:[#allocation3 + $0xe8] sm:$0xf] %vm1280_vm4, %v1274_v13  ;;  %v1522_v13 = vmul.f32 %v2959_v28, %v2959_v28 }
 0x1a5   :  { %v1407_v49 = vadd.f32 %v1406_v40, %v1405_v33  ;;  %v841_v44 = vpop.f32.mrf.mxu2  ;;  %v1010_v63 = vpop.f32.mrf.mxu3 }
 0x1a6   :  { %1312 = vst.msk [vmem:[#allocation3 + $0x7c] sm:$0xf] %vm1280_vm4, %v1247_v27  ;;  %v1605_v51 = vsel %vm21_vm3, %v1511_v42, 0.0  ;;  %v1011_v53 = vadd.f32 %v1010_v63, %v841_v44  ;;  %v2145_v27 = vld [vmem:[#allocation2 + $0x130] sm:$0xff]  ;;  %v147_v42 = vld [vmem:[#allocation2 + $0x1e8] sm:$0xff]  ;;  %v1520_v63 = vmul.f32 %v2920_v45, %v2920_v45 }
 0x1a7   :  { %v1409_v48 = vadd.f32 %v1408_v50, %v1407_v49  ;;  %v1606_v57 = vadd.f32 %v1605_v51, %v1604_v43  ;;  %v1518_v40 = vmul.f32 %v2145_v27, %v2145_v27  ;;  %v1617_v51 = vsel %vm21_vm3, %v1517_v26, 0.0 }
 0x1a8   :  { %v1080_v14 = vadd.f32 %v1011_v53, %v146_v60 }
 0x1a9   :  { %v1411_v30 = vadd.f32 %v1410_v8, %v1409_v48  ;;  %v1608_v2 = vadd.f32 %v1607_v55, %v1606_v57  ;;  %v3221_v23 = vld [vmem:[#allocation2 + $0x1d8] sm:$0xff]  ;;  %v1420_v48 = vsel %vm21_vm3, %v2145_v27, 0.0  ;;  %v1619_v8 = vsel %vm21_vm3, %v1518_v40, 0.0 }
 0x1aa   :  { %1145 = vst.msk [vmem:[#allocation2 + $0x1e0] sm:$0xff] %vm21_vm3, %v1080_v14  ;;  %v1275_v20 = vpack.c.bf16 %v3221_v23, %v3221_v23  ;;  %v2146_v57 = vld [vmem:[#allocation2 + $0x138] sm:$0xff]  ;;  %v1432_v27 = vsel %vm21_vm3, %v2996_v10, 0.0 }
 0x1ab   :  { %v1413_v7 = vadd.f32 %v1412_v56, %v1411_v30  ;;  %v1610_v17 = vadd.f32 %v1609_v4, %v1608_v2  ;;  %v1519_v44 = vmul.f32 %v2146_v57, %v2146_v57  ;;  %v1422_v60 = vsel %vm21_vm3, %v2146_v57, 0.0 }
 0x1ac   :  { %1340 = vst.msk [vmem:[#allocation3 + $0xec] sm:$0xf] %vm1280_vm4, %v1275_v20  ;;  %v1521_v4 = vmul.f32 %v2934_v1, %v2934_v1 }
 0x1ad   :  { %v1415_v24 = vadd.f32 %v1414_v58, %v1413_v7  ;;  %v1612_v0 = vadd.f32 %v1611_v15, %v1610_v17  ;;  %v843_v21 = vpop.f32.mrf.mxu2  ;;  %v1012_v43 = vpop.f32.mrf.mxu3  ;;  %v1621_v3 = vsel %vm21_vm3, %v1519_v44, 0.0  ;;  %v1623_v15 = vsel %vm21_vm3, %v1520_v63, 0.0 }
 0x1ae   :  { %v1013_v62 = vadd.f32 %v1012_v43, %v843_v21  ;;  %v1426_v58 = vsel %vm21_vm3, %v2934_v1, 0.0  ;;  %v1625_v20 = vsel %vm21_vm3, %v1521_v4, 0.0  ;;  %v1430_v1 = vsel %vm21_vm3, %v2973_v41, 0.0 }
 0x1af   :  { %v1417_v36 = vadd.f32 %v1416_v29, %v1415_v24  ;;  %v1614_v33 = vadd.f32 %v1613_v9, %v1612_v0  ;;  %v1428_v9 = vsel %vm21_vm3, %v2959_v28, 0.0  ;;  %v1523_v29 = vmul.f32 %v2973_v41, %v2973_v41 }
 0x1b0   :  { %v1081_v55 = vadd.f32 %v1013_v62, %v147_v42  ;;  %v1627_v21 = vsel %vm21_vm3, %v1522_v13, 0.0  ;;  %v1525_v41 = vmul.f32 %v3008_v32, %v3008_v32  ;;  %v149_v62 = vld [vmem:[#allocation2 + $0x1f8] sm:$0xff] }
 0x1b1   :  { %v1419_v49 = vadd.f32 %v1418_v38, %v1417_v36  ;;  %v1616_v50 = vadd.f32 %v1615_v37, %v1614_v33  ;;  %v3240_v30 = vld [vmem:[#allocation2 + $0x1e0] sm:$0xff]  ;;  %v1524_v37 = vmul.f32 %v2996_v10, %v2996_v10  ;;  %v1629_v42 = vsel %vm21_vm3, %v1523_v29, 0.0 }
 0x1b2   :  { %1146 = vst.msk [vmem:[#allocation2 + $0x1e8] sm:$0xff] %vm21_vm3, %v1081_v55  ;;  %v1276_v56 = vpack.c.bf16 %v3240_v30, %v3240_v30  ;;  %v1526_v10 = vmul.f32 %v3019_v52, %v3019_v52  ;;  %v1446_v29 = vsel %vm21_vm3, %v3082_v18, 0.0 }
 0x1b3   :  { %v1421_v25 = vadd.f32 %v1420_v48, %v1419_v49  ;;  %v1618_v59 = vadd.f32 %v1617_v51, %v1616_v50  ;;  %v1434_v50 = vsel %vm21_vm3, %v3008_v32, 0.0  ;;  %v1631_v57 = vsel %vm21_vm3, %v1524_v37, 0.0 }
 0x1b4   :  { %1341 = vst.msk [vmem:[#allocation3 + $0xf0] sm:$0xf] %vm1280_vm4, %v1276_v56 }
 0x1b5   :  { %v1423_v2 = vadd.f32 %v1422_v60, %v1421_v25  ;;  %v1620_v53 = vadd.f32 %v1619_v8, %v1618_v59  ;;  %v846_v7 = vpop.f32.mrf.mxu2  ;;  %v1015_v22 = vpop.f32.mrf.mxu3  ;;  %v1436_v59 = vsel %vm21_vm3, %v3019_v52, 0.0  ;;  %v1633_v8 = vsel %vm21_vm3, %v1525_v41, 0.0 }
 0x1b6   :  { %v1016_v24 = vadd.f32 %v1015_v22, %v846_v7  ;;  %v1527_v60 = vmul.f32 %v3029_v11, %v3029_v11  ;;  %v1440_v7 = vsel %vm21_vm3, %v3046_v31, 0.0 }
 0x1b7   :  { %v1425_v17 = vadd.f32 %v1424_v5, %v1423_v2  ;;  %v1622_v14 = vadd.f32 %v1621_v3, %v1620_v53  ;;  %v1438_v2 = vsel %vm21_vm3, %v3029_v11, 0.0  ;;  %v1635_v3 = vsel %vm21_vm3, %v1526_v10, 0.0 }
 0x1b8   :  { %v1082_v34 = vadd.f32 %v1016_v24, %v148_v19  ;;  %v1528_v5 = vmul.f32 %v3046_v31, %v3046_v31  ;;  %v1637_v11 = vsel %vm21_vm3, %v1527_v60, 0.0  ;;  %v1530_v31 = vmul.f32 %v3070_v61, %v3070_v61 }
 0x1b9   :  { %v1427_v45 = vadd.f32 %v1426_v58, %v1425_v17  ;;  %v1624_v0 = vadd.f32 %v1623_v15, %v1622_v14  ;;  %v3263_v33 = vld [vmem:[#allocation2 + $0x1e8] sm:$0xff]  ;;  %v1529_v14 = vmul.f32 %v3058_v47, %v3058_v47  ;;  %v1442_v58 = vsel %vm21_vm3, %v3058_v47, 0.0 }
 0x1ba   :  { %1147 = vst.msk [vmem:[#allocation2 + $0x1f0] sm:$0xff] %vm21_vm3, %v1082_v34  ;;  %v1277_v28 = vpack.c.bf16 %v3263_v33, %v3263_v33  ;;  %v1639_v13 = vsel %vm21_vm3, %v1528_v5, 0.0  ;;  %v1444_v24 = vsel %vm21_vm3, %v3070_v61, 0.0  ;;  %v1532_v61 = vmul.f32 %v3098_v46, %v3098_v46 }
 0x1bb   :  { %v1429_v26 = vadd.f32 %v1428_v9, %v1427_v45  ;;  %v1626_v36 = vadd.f32 %v1625_v20, %v1624_v0  ;;  %v1531_v0 = vmul.f32 %v3082_v18, %v3082_v18  ;;  %v1641_v20 = vsel %vm21_vm3, %v1529_v14, 0.0 }
 0x1bc   :  { %1342 = vst.msk [vmem:[#allocation3 + $0xf4] sm:$0xf] %vm1280_vm4, %v1277_v28  ;;  %v1533_v18 = vmul.f32 %v3103_v54, %v3103_v54  ;;  %v1647_v41 = vsel %vm21_vm3, %v1532_v61, 0.0  ;;  %v1536_v10 = vmul.f32 %v3190_v6, %v3190_v6  ;;  %v1539_v5 = vmul.f32 %v3221_v23, %v3221_v23 }
 0x1bd   :  { %v1431_v38 = vadd.f32 %v1430_v1, %v1429_v26  ;;  %v1628_v40 = vadd.f32 %v1627_v21, %v1626_v36  ;;  %v848_v43 = vpop.f32.mrf.mxu2  ;;  %v1017_v51 = vpop.f32.mrf.mxu3  ;;  %v1643_v1 = vsel %vm21_vm3, %v1530_v31, 0.0  ;;  %v1448_v21 = vsel %vm21_vm3, %v3098_v46, 0.0 }
 0x1be   :  { %v1018_v44 = vadd.f32 %v1017_v51, %v848_v43  ;;  %v1534_v46 = vmul.f32 %v3126_v16, %v3126_v16  ;;  %v1452_v43 = vsel %vm21_vm3, %v3126_v16, 0.0  ;;  %v1454_v51 = vsel %vm21_vm3, %v3131_v35, 0.0 }
 0x1bf   :  { %v1433_v49 = vadd.f32 %v1432_v27, %v1431_v38  ;;  %v1630_v48 = vadd.f32 %v1629_v42, %v1628_v40  ;;  %v1645_v38 = vsel %vm21_vm3, %v1531_v0, 0.0  ;;  %v1450_v27 = vsel %vm21_vm3, %v3103_v54, 0.0 }
 0x1c0   :  { %v1083_v32 = vadd.f32 %v1018_v44, %v149_v62  ;;  %v1535_v62 = vmul.f32 %v3131_v35, %v3131_v35  ;;  %v1649_v54 = vsel %vm21_vm3, %v1533_v18, 0.0  ;;  %v1651_v44 = vsel %vm21_vm3, %v1534_v46, 0.0 }
 0x1c1   :  { %v1435_v25 = vadd.f32 %v1434_v50, %v1433_v49  ;;  %v1632_v55 = vadd.f32 %v1631_v57, %v1630_v48  ;;  %v3289_v53 = vld [vmem:[#allocation2 + $0x1f0] sm:$0xff]  ;;  %v1456_v16 = vsel %vm21_vm3, %v3190_v6, 0.0  ;;  %v1458_v35 = vsel %vm21_vm3, %v3198_v12, 0.0 }
 0x1c2   :  { %1148 = vst.msk [vmem:[#allocation2 + $0x1f8] sm:$0xff] %vm21_vm3, %v1083_v32  ;;  %v1278_v52 = vpack.c.bf16 %v3289_v53, %v3289_v53  ;;  %v1460_v6 = vsel %vm21_vm3, %v3215_v39, 0.0 }
 0x1c3   :  { %v1437_v63 = vadd.f32 %v1436_v59, %v1435_v25  ;;  %v1634_v56 = vadd.f32 %v1633_v8, %v1632_v55  ;;  %v1537_v55 = vmul.f32 %v3198_v12, %v3198_v12  ;;  %v1653_v8 = vsel %vm21_vm3, %v1535_v62, 0.0 }
 0x1c4   :  { %1343 = vst.msk [vmem:[#allocation3 + $0xf8] sm:$0xf] %vm1280_vm4, %v1278_v52  ;;  %v1462_v12 = vsel %vm21_vm3, %v3221_v23, 0.0  ;;  %v1466_v23 = vsel %vm21_vm3, %v3263_v33, 0.0 }
 0x1c5   :  { %v1439_v4 = vadd.f32 %v1438_v2, %v1437_v63  ;;  %v1636_v17 = vadd.f32 %v1635_v3, %v1634_v56  ;;  %v1538_v63 = vmul.f32 %v3215_v39, %v3215_v39  ;;  %v1655_v2 = vsel %vm21_vm3, %v1536_v10, 0.0 }
 0x1c6   :  { %v1657_v52 = vsel %vm21_vm3, %v1537_v55, 0.0  ;;  %v1464_v39 = vsel %vm21_vm3, %v3240_v30, 0.0 }
 0x1c7   :  { %v1441_v15 = vadd.f32 %v1440_v7, %v1439_v4  ;;  %v1638_v19 = vadd.f32 %v1637_v11, %v1636_v17  ;;  %v1540_v17 = vmul.f32 %v3240_v30, %v3240_v30  ;;  %v1659_v11 = vsel %vm21_vm3, %v1538_v63, 0.0 }
 0x1c8   :  { %v1468_v30 = vsel %vm21_vm3, %v3289_v53, 0.0 }
 0x1c9   :  { %v1443_v22 = vadd.f32 %v1442_v58, %v1441_v15  ;;  %v1640_v45 = vadd.f32 %v1639_v13, %v1638_v19  ;;  %v3318_v9 = vld [vmem:[#allocation2 + $0x1f8] sm:$0xff]  ;;  %v1541_v58 = vmul.f32 %v3263_v33, %v3263_v33  ;;  %v1661_v19 = vsel %vm21_vm3, %v1539_v5, 0.0 }
 0x1ca   :  { %v1279_v26 = vpack.c.bf16 %v3318_v9, %v3318_v9  ;;  %v1542_v13 = vmul.f32 %v3289_v53, %v3289_v53  ;;  %v1543_v0 = vmul.f32 %v3318_v9, %v3318_v9  ;;  %v1470_v33 = vsel %vm21_vm3, %v3318_v9, 0.0 }
 0x1cb   :  { %v1445_v47 = vadd.f32 %v1444_v24, %v1443_v22  ;;  %v1642_v34 = vadd.f32 %v1641_v20, %v1640_v45  ;;  %v1663_v24 = vsel %vm21_vm3, %v1540_v17, 0.0  ;;  %v1665_v20 = vsel %vm21_vm3, %v1541_v58, 0.0 }
 0x1cc   :  { %1344 = vst.msk [vmem:[#allocation3 + $0xfc] sm:$0xf] %vm1280_vm4, %v1279_v26  ;;  %v1667_v26 = vsel %vm21_vm3, %v1542_v13, 0.0 }
 0x1cd   :  { %v1447_v36 = vadd.f32 %v1446_v29, %v1445_v47  ;;  %v1644_v37 = vadd.f32 %v1643_v1, %v1642_v34  ;;  %1690 = dma.vmem_to_hbm [thread:$0]  %s1683_s22, 4096, %s1685_s24, [#allocation4], %s2226_s2, %s2226_s2, %s2227_s25   ;;  %v1669_v1 = vsel %vm21_vm3, %v1543_v0, 0.0 }
 0x1cf   :  { %v1449_v28 = vadd.f32 %v1448_v21, %v1447_v36  ;;  %v1646_v40 = vadd.f32 %v1645_v38, %v1644_v37 }
 0x1d1   :  { %v1451_v42 = vadd.f32 %v1450_v27, %v1449_v28  ;;  %v1648_v49 = vadd.f32 %v1647_v41, %v1646_v40 }
 0x1d3   :  { %v1453_v50 = vadd.f32 %v1452_v43, %v1451_v42  ;;  %v1650_v48 = vadd.f32 %v1649_v54, %v1648_v49 }
 0x1d5   :  { %v1455_v57 = vadd.f32 %v1454_v51, %v1453_v50  ;;  %v1652_v25 = vadd.f32 %v1651_v44, %v1650_v48 }
 0x1d7   :  { %v1457_v59 = vadd.f32 %v1456_v16, %v1455_v57  ;;  %v1654_v60 = vadd.f32 %v1653_v8, %v1652_v25 }
 0x1d9   :  { %v1459_v32 = vadd.f32 %v1458_v35, %v1457_v59  ;;  %v1656_v56 = vadd.f32 %v1655_v2, %v1654_v60 }
 0x1db   :  { %v1461_v3 = vadd.f32 %v1460_v6, %v1459_v32  ;;  %v1658_v4 = vadd.f32 %v1657_v52, %v1656_v56 }
 0x1dd   :  { %v1463_v7 = vadd.f32 %v1462_v12, %v1461_v3  ;;  %v1660_v14 = vadd.f32 %v1659_v11, %v1658_v4 }
 0x1df   :  { %v1465_v15 = vadd.f32 %v1464_v39, %v1463_v7  ;;  %v1662_v22 = vadd.f32 %v1661_v19, %v1660_v14 }
 0x1e1   :  { %v1467_v31 = vadd.f32 %v1466_v23, %v1465_v15  ;;  %v1664_v45 = vadd.f32 %v1663_v24, %v1662_v22 }
 0x1e3   :  { %v1469_v47 = vadd.f32 %v1468_v30, %v1467_v31  ;;  %v1666_v29 = vadd.f32 %v1665_v20, %v1664_v45 }
 0x1e5   :  { %v1471_v34 = vadd.f32 %v1470_v33, %v1469_v47  ;;  %v1668_v36 = vadd.f32 %v1667_v26, %v1666_v29 }
 0x1e7   :  { %v1472_v61 = vrot.slane %v1471_v34, 4  ;;  %v1670_v21 = vadd.f32 %v1669_v1, %v1668_v36 }
 0x1e9   :  { %v1473_v53 = vadd.f32 %v1472_v61, %v1471_v34  ;;  %v1671_v37 = vrot.slane %v1670_v21, 4 }
 0x1eb   :  { %v1474_v28 = vrot.slane %v1473_v53, 2  ;;  %v1672_v18 = vadd.f32 %v1671_v37, %v1670_v21 }
 0x1ed   :  { %v1475_v38 = vadd.f32 %v1474_v28, %v1473_v53  ;;  %v1673_v9 = vrot.slane %v1672_v18, 2 }
 0x1ef   :  { %v1476_v27 = vrot.slane %v1475_v38, 1  ;;  %v1674_v40 = vadd.f32 %v1673_v9, %v1672_v18 }
 0x1f1   :  { %v1477_v42 = vadd.f32 %v1476_v27, %v1475_v38  ;;  %v1675_v46 = vrot.slane %v1674_v40, 1 }
 0x1f3   :  { %1479 = vst.msk [vmem:[#allocation5] sm:$0x1] %vm1478_vm5, %v1477_v42  ;;  %v1676_v41 = vadd.f32 %v1675_v46, %v1674_v40 }
 0x1f4   :  { %1701 = dma.vmem_to_hbm [thread:$0]  %s1697_s27, 16, %s1699_s30, [#allocation6]  }
 0x1f5   :  { %1677 = vst.msk [vmem:[#allocation7] sm:$0x1] %vm1478_vm5, %v1676_v41 }
 0x1f6   :  { %1712 = dma.vmem_to_hbm [thread:$0]  %s1708_s6, 16, %s1710_s9, [#allocation6]  }
 0x1f7   :  { %2219 = dma.done.wait [#allocation4], 4096  }
 0x1f8   :  { %2220 = vsyncadd [#allocation4], 4294963200 }
 0x1f9   :  { %2221 = dma.done.wait [#allocation6], 32  }
 0x1fa   :  { %2222 = vsyncadd [#allocation6], 4294967264 }
 0x1fb   :  { %1725 = vsyncpa [#allocation4], 1 }
 0x1fc   :  { %1726 = vsyncpa [#allocation6], 1 }

</bundles_post_ra>
